<compile_context>
chip_gen: v5e
topology: v5e:2x2
jax: 0.10.0
libtpu: 0.0.40
codegen_flags: <defaults>
</compile_context>

<pallas_src>
import functools

import jax
import jax.numpy as jnp
from jax.experimental import pallas as pl
from jax.experimental.pallas import tpu as pltpu


# ---------------------------------------------------------------------------
# Pallas kernel: one fused gate matmul + ConvLSTM cell update (transposed).
# ---------------------------------------------------------------------------
def convlstm_cell_kernel(p_ref, w_ref, b_ref, c_ref, ch_ref, cc_ref):
    # p : (K, TM)      fused [x | h] im2col patches, K on sublanes, M on lanes
    # w : (4*Hc, K)    stacked gate weights (rows: i, f, c, o blocks)
    # b : (4*Hc, 1)    bias column (only the Wx path carries a bias)
    # c : (Hc, TM)     previous cell state
    # ch, cc : (Hc, TM) outputs
    gates = jnp.dot(w_ref[...], p_ref[...], preferred_element_type=jnp.float32)
    gates = gates + b_ref[...]                       # broadcast bias over lanes

    hc = cc_ref.shape[0]
    gi = jax.nn.sigmoid(gates[0 * hc:1 * hc, :])     # input gate
    gf = jax.nn.sigmoid(gates[1 * hc:2 * hc, :])     # forget gate
    gc = jnp.tanh(gates[2 * hc:3 * hc, :])           # candidate
    go = jax.nn.sigmoid(gates[3 * hc:4 * hc, :])     # output gate

    cc = gf * c_ref[...] + gi * gc
    ch = go * jnp.tanh(cc)

    cc_ref[...] = cc
    ch_ref[...] = ch


# ---------------------------------------------------------------------------
# Glue: circular padding + im2col patch extraction (layout only, no hot math).
# ---------------------------------------------------------------------------
def _circular_patches_kxm(x_nhwc, k):
    """Returns (k*k*C, N*H*W) patches; rows ordered (kh, kw, c), cols (n,h,w)."""
    pad = k // 2
    n, hs, ws, c = x_nhwc.shape
    xp = jnp.pad(x_nhwc, ((0, 0), (pad, pad), (pad, pad), (0, 0)), mode="wrap")
    pieces = []
    for di in range(k):
        for dj in range(k):
            pieces.append(xp[:, di:di + hs, dj:dj + ws, :])
    p = jnp.stack(pieces, axis=3)                    # (N, H, W, k*k, C)
    p = p.reshape(n * hs * ws, k * k * c)            # (M, K)
    return p.T                                       # (K, M)


def _stack_gate_weights(w_list, k):
    # Each w in PyTorch OIHW layout (out, in, kh, kw). Reorder to match the
    # (kh, kw, c) patch flattening and stack the 4 gates along out-channels.
    mats = []
    for w in w_list:
        o, i, kh, kw = w.shape
        mats.append(jnp.transpose(w, (2, 3, 1, 0)).reshape(kh * kw * i, o))
    return jnp.concatenate(mats, axis=1)             # (k*k*in, 4*out)


@functools.partial(jax.jit, static_argnames=("input_kernel_size",))
def convlstm_cell_forward(x, h, c, params, input_kernel_size=3):
    """x: (N, Cin, H, W); h, c: (N, Hc, H, W). Returns (ch, cc) in NCHW."""
    n, cin, hs, ws = x.shape
    hc = h.shape[1]
    kx = input_kernel_size
    kh = 3  # hidden_kernel_size (fixed in the PyTorch module)

    # NCHW -> NHWC -> im2col, then fuse the x and h patch matrices along K.
    x_nhwc = jnp.transpose(x, (0, 2, 3, 1))
    h_nhwc = jnp.transpose(h, (0, 2, 3, 1))
    px = _circular_patches_kxm(x_nhwc, kx)           # (kx*kx*Cin, M)
    ph = _circular_patches_kxm(h_nhwc, kh)           # (3*3*Hc,   M)
    p_fused = jnp.concatenate([px, ph], axis=0)      # (K_total,  M)

    # Cell state in (Hc, M) layout matching the (n, h, w) column ordering.
    c_t = jnp.transpose(c, (1, 0, 2, 3)).reshape(hc, n * hs * ws)

    # Stack the 8 conv weights into one (4*Hc, K_total) matrix and one bias col.
    wx = _stack_gate_weights(
        [params["Wxi_w"], params["Wxf_w"], params["Wxc_w"], params["Wxo_w"]], kx)
    wh = _stack_gate_weights(
        [params["Whi_w"], params["Whf_w"], params["Whc_w"], params["Who_w"]], kh)
    w_fused = jnp.concatenate([wx, wh], axis=0).T    # (4*Hc, K_total)
    bias = jnp.concatenate(
        [params["Wxi_b"], params["Wxf_b"], params["Wxc_b"], params["Wxo_b"]],
        axis=0).reshape(4 * hc, 1)

    m = n * hs * ws
    k_total = p_fused.shape[0]

    # Tile choice: at most 2 big "parallel" row tiles (keeps v7x's two
    # TensorCores busy, minimizes per-step pipeline overhead elsewhere), with a
    # cap so double-buffered tiles stay well inside scoped VMEM if scaled up.
    assert m % 128 == 0, "N*H*W must be a multiple of 128"
    tm = m
    if m % 256 == 0:
        tm = m // 2                                  # 2 steps -> both TCs on v7x
    max_tm = 4096                                    # VMEM-safe even on v7x
    while tm > max_tm and tm % 2 == 0 and (tm // 2) % 128 == 0:
        tm //= 2
    assert m % tm == 0 and tm % 128 == 0
    n_steps = m // tm

    grid_spec = pltpu.PrefetchScalarGridSpec(
        num_scalar_prefetch=0,
        grid=(n_steps,),
        in_specs=[
            pl.BlockSpec((k_total, tm), lambda i: (0, i)),      # fused patches
            pl.BlockSpec((4 * hc, k_total), lambda i: (0, 0)),  # fused weights
            pl.BlockSpec((4 * hc, 1), lambda i: (0, 0)),        # bias column
            pl.BlockSpec((hc, tm), lambda i: (0, i)),           # prev cell
        ],
        out_specs=[
            pl.BlockSpec((hc, tm), lambda i: (0, i)),           # ch
            pl.BlockSpec((hc, tm), lambda i: (0, i)),           # cc
        ],
    )

    ch_t, cc_t = pl.pallas_call(
        convlstm_cell_kernel,
        out_shape=(jax.ShapeDtypeStruct((hc, m), jnp.float32),
                   jax.ShapeDtypeStruct((hc, m), jnp.float32)),
        grid_spec=grid_spec,
        compiler_params=pltpu.CompilerParams(
            dimension_semantics=("parallel",)),
    )(p_fused, w_fused, bias, c_t)

    # (Hc, M) -> (Hc, N, H, W) -> NCHW
    ch = jnp.transpose(ch_t.reshape(hc, n, hs, ws), (1, 0, 2, 3))
    cc = jnp.transpose(cc_t.reshape(hc, n, hs, ws), (1, 0, 2, 3))
    return ch, cc


# ---------------------------------------------------------------------------
# Pure-JAX reference (mirrors the PyTorch forward) for a correctness check.
# ---------------------------------------------------------------------------
def _conv2d_circular_ref(x_nchw, w_oihw, b=None):
    k = w_oihw.shape[-1]
    pad = k // 2
    xp = jnp.pad(x_nchw, ((0, 0), (0, 0), (pad, pad), (pad, pad)), mode="wrap")
    y = jax.lax.conv_general_dilated(
        xp, w_oihw, window_strides=(1, 1), padding="VALID",
        dimension_numbers=("NCHW", "OIHW", "NCHW"))
    if b is not None:
        y = y + b[None, :, None, None]
    return y


def convlstm_cell_reference(x, h, c, p):
    ci = jax.nn.sigmoid(_conv2d_circular_ref(x, p["Wxi_w"], p["Wxi_b"])
                        + _conv2d_circular_ref(h, p["Whi_w"]))
    cf = jax.nn.sigmoid(_conv2d_circular_ref(x, p["Wxf_w"], p["Wxf_b"])
                        + _conv2d_circular_ref(h, p["Whf_w"]))
    cc = cf * c + ci * jnp.tanh(_conv2d_circular_ref(x, p["Wxc_w"], p["Wxc_b"])
                                + _conv2d_circular_ref(h, p["Whc_w"]))
    co = jax.nn.sigmoid(_conv2d_circular_ref(x, p["Wxo_w"], p["Wxo_b"])
                        + _conv2d_circular_ref(h, p["Who_w"]))
    ch = co * jnp.tanh(cc)
    return ch, cc


# ---------------------------------------------------------------------------
if __name__ == "__main__":
    # Module config: input_channels=4, hidden_channels=32,
    # input_kernel_size=3, input_stride=1, input_padding=1 (PhyCRNet ConvLSTM).
    N, Cin, Hc, S, K = 2, 4, 32, 16, 3

    key = jax.random.PRNGKey(0)
    ks = jax.random.split(key, 16)

    def w(k_, shape):
        return (jax.random.normal(k_, shape, jnp.float32) * 0.1)

    params = {
        "Wxi_w": w(ks[0], (Hc, Cin, K, K)), "Wxi_b": jnp.zeros((Hc,), jnp.float32),
        "Wxf_w": w(ks[1], (Hc, Cin, K, K)), "Wxf_b": jnp.zeros((Hc,), jnp.float32),
        "Wxc_w": w(ks[2], (Hc, Cin, K, K)), "Wxc_b": jnp.zeros((Hc,), jnp.float32),
        "Wxo_w": w(ks[3], (Hc, Cin, K, K)), "Wxo_b": jnp.ones((Hc,), jnp.float32),
        "Whi_w": w(ks[4], (Hc, Hc, 3, 3)),
        "Whf_w": w(ks[5], (Hc, Hc, 3, 3)),
        "Whc_w": w(ks[6], (Hc, Hc, 3, 3)),
        "Who_w": w(ks[7], (Hc, Hc, 3, 3)),
    }

    x = jax.random.normal(ks[8], (N, Cin, S, S), jnp.float32)
    h = jax.random.normal(ks[9], (N, Hc, S, S), jnp.float32)
    c = jax.random.normal(ks[10], (N, Hc, S, S), jnp.float32)

    ch, cc = convlstm_cell_forward(x, h, c, params, input_kernel_size=K)
    jax.block_until_ready((ch, cc))

    ch_ref, cc_ref = convlstm_cell_reference(x, h, c, params)
    assert ch.shape == (N, Hc, S, S) and cc.shape == (N, Hc, S, S)
    assert jnp.max(jnp.abs(ch - ch_ref)) < 1e-4
    assert jnp.max(jnp.abs(cc - cc_ref)) < 1e-4

    print("KERNEL_OK")
</pallas_src>

<mosaic_0001>
module attributes {stable_mosaic.version = 11 : i64} {
  func.func @convlstm_cell_kernel(%arg0: i32, %arg1: memref<324x256xf32, #tpu.memory_space<vmem>>, %arg2: memref<128x324xf32, #tpu.memory_space<vmem>>, %arg3: memref<128x1xf32, #tpu.memory_space<vmem>>, %arg4: memref<32x256xf32, #tpu.memory_space<vmem>>, %arg5: memref<32x256xf32, #tpu.memory_space<vmem>>, %arg6: memref<32x256xf32, #tpu.memory_space<vmem>>) attributes {dimension_semantics = [#tpu.dimension_semantics<parallel>], iteration_bounds = array<i64: 2>, scalar_prefetch = 0 : i64, scratch_operands = 0 : i64, tpu.core_type = #tpu.core_type<tc>, window_params = [{transform_indices = @transform_0, window_bounds = array<i64: 324, 256>}, {pipeline_mode = #tpu.pipeline_mode<synchronous>, transform_indices = @transform_1, window_bounds = array<i64: 128, 324>}, {pipeline_mode = #tpu.pipeline_mode<synchronous>, transform_indices = @transform_2, window_bounds = array<i64: 128, 1>}, {transform_indices = @transform_3, window_bounds = array<i64: 32, 256>}, {transform_indices = @transform_4, window_bounds = array<i64: 32, 256>}, {transform_indices = @transform_5, window_bounds = array<i64: 32, 256>}]} {
    %c0 = arith.constant 0 : index
    %c0_0 = arith.constant 0 : index
    %0 = vector.load %arg2[%c0, %c0_0] : memref<128x324xf32, #tpu.memory_space<vmem>>, vector<128x324xf32>
    %c0_1 = arith.constant 0 : index
    %c0_2 = arith.constant 0 : index
    %1 = vector.load %arg1[%c0_1, %c0_2] : memref<324x256xf32, #tpu.memory_space<vmem>>, vector<324x256xf32>
    %cst = arith.constant dense<0.000000e+00> : vector<128x256xf32>
    %2 = tpu.matmul %0, %1, %cst {dimension_numbers = #tpu.dot_dimension_numbers<[1], [0], [0], [1], [0, 0, 1, 1], [], []>} : vector<128x324xf32>, vector<324x256xf32>, vector<128x256xf32> -> vector<128x256xf32>
    %c0_3 = arith.constant 0 : index
    %c0_4 = arith.constant 0 : index
    %3 = vector.load %arg3[%c0_3, %c0_4] : memref<128x1xf32, #tpu.memory_space<vmem>>, vector<128x1xf32>
    %4 = vector.broadcast %3 : vector<128x1xf32> to vector<128x256xf32>
    %5 = arith.addf %2, %4 : vector<128x256xf32>
    %6 = vector.extract_strided_slice %5 {offsets = [0, 0], sizes = [32, 256], strides = [1, 1]} : vector<128x256xf32> to vector<32x256xf32>
    %7 = arith.negf %6 : vector<32x256xf32>
    %8 = math.exp %7 : vector<32x256xf32>
    %cst_5 = arith.constant 1.000000e+00 : f32
    %9 = vector.broadcast %cst_5 : f32 to vector<32x256xf32>
    %10 = arith.addf %9, %8 : vector<32x256xf32>
    %11 = arith.divf %9, %10 : vector<32x256xf32>
    %12 = vector.extract_strided_slice %5 {offsets = [32, 0], sizes = [32, 256], strides = [1, 1]} : vector<128x256xf32> to vector<32x256xf32>
    %13 = arith.negf %12 : vector<32x256xf32>
    %14 = math.exp %13 : vector<32x256xf32>
    %cst_6 = arith.constant 1.000000e+00 : f32
    %15 = vector.broadcast %cst_6 : f32 to vector<32x256xf32>
    %16 = arith.addf %15, %14 : vector<32x256xf32>
    %17 = arith.divf %15, %16 : vector<32x256xf32>
    %18 = vector.extract_strided_slice %5 {offsets = [64, 0], sizes = [32, 256], strides = [1, 1]} : vector<128x256xf32> to vector<32x256xf32>
    %19 = math.tanh %18 : vector<32x256xf32>
    %20 = vector.extract_strided_slice %5 {offsets = [96, 0], sizes = [32, 256], strides = [1, 1]} : vector<128x256xf32> to vector<32x256xf32>
    %21 = arith.negf %20 : vector<32x256xf32>
    %22 = math.exp %21 : vector<32x256xf32>
    %cst_7 = arith.constant 1.000000e+00 : f32
    %23 = vector.broadcast %cst_7 : f32 to vector<32x256xf32>
    %24 = arith.addf %23, %22 : vector<32x256xf32>
    %25 = arith.divf %23, %24 : vector<32x256xf32>
    %c0_8 = arith.constant 0 : index
    %c0_9 = arith.constant 0 : index
    %26 = vector.load %arg4[%c0_8, %c0_9] : memref<32x256xf32, #tpu.memory_space<vmem>>, vector<32x256xf32>
    %27 = arith.mulf %17, %26 : vector<32x256xf32>
    %28 = arith.mulf %11, %19 : vector<32x256xf32>
    %29 = arith.addf %27, %28 : vector<32x256xf32>
    %30 = math.tanh %29 : vector<32x256xf32>
    %31 = arith.mulf %25, %30 : vector<32x256xf32>
    %c0_10 = arith.constant 0 : index
    %c0_11 = arith.constant 0 : index
    %32 = vector.load %arg6[%c0_10, %c0_11] : memref<32x256xf32, #tpu.memory_space<vmem>>, vector<32x256xf32>
    tpu.vector_store %arg6[%c0_10, %c0_11], %29 {strides = array<i32>} : memref<32x256xf32, #tpu.memory_space<vmem>>, vector<32x256xf32>,
    %c0_12 = arith.constant 0 : index
    %c0_13 = arith.constant 0 : index
    %33 = vector.load %arg5[%c0_12, %c0_13] : memref<32x256xf32, #tpu.memory_space<vmem>>, vector<32x256xf32>
    tpu.vector_store %arg5[%c0_12, %c0_13], %31 {strides = array<i32>} : memref<32x256xf32, #tpu.memory_space<vmem>>, vector<32x256xf32>,
    return
  }
  func.func @transform_0(%arg0: i32) -> (i32, i32) {
    %c0_i32 = arith.constant 0 : i32
    %c0_i32_0 = arith.constant 0 : i32
    return %c0_i32, %arg0 : i32, i32
  }
  func.func @transform_1(%arg0: i32) -> (i32, i32) {
    %c0_i32 = arith.constant 0 : i32
    %c0_i32_0 = arith.constant 0 : i32
    %c0_i32_1 = arith.constant 0 : i32
    return %c0_i32, %c0_i32_0 : i32, i32
  }
  func.func @transform_2(%arg0: i32) -> (i32, i32) {
    %c0_i32 = arith.constant 0 : i32
    %c0_i32_0 = arith.constant 0 : i32
    %c0_i32_1 = arith.constant 0 : i32
    return %c0_i32, %c0_i32_0 : i32, i32
  }
  func.func @transform_3(%arg0: i32) -> (i32, i32) {
    %c0_i32 = arith.constant 0 : i32
    %c0_i32_0 = arith.constant 0 : i32
    return %c0_i32, %arg0 : i32, i32
  }
  func.func @transform_4(%arg0: i32) -> (i32, i32) {
    %c0_i32 = arith.constant 0 : i32
    %c0_i32_0 = arith.constant 0 : i32
    return %c0_i32, %arg0 : i32, i32
  }
  func.func @transform_5(%arg0: i32) -> (i32, i32) {
    %c0_i32 = arith.constant 0 : i32
    %c0_i32_0 = arith.constant 0 : i32
    return %c0_i32, %arg0 : i32, i32
  }
}

</mosaic_0001>

<bundles_post_ra>
// kernel: convlstm_cell_forward.1
= control target key start
LH: loop header
LB: loop body
LE: loop exit
PB: predicated region body
PF: predicated region fallthrough
CT: control target
= control target key end

     0   :  { %s2171_s18 = smov 0   ;;  %s2173_s19 = smov 0   ;;  %s3631_s0 = inlined_call_operand.vmem [shape: f32[324,512], index: 0, kind: input, shape index: {}]   ;;  %s3632_s1 = inlined_call_operand.vmem [shape: f32[128,324], index: 1, kind: input, shape index: {}]   ;;  %s3633_s2 = inlined_call_operand.vmem [shape: f32[128,1], index: 2, kind: input, shape index: {}]   ;;  %s3634_s3 = inlined_call_operand.vmem [shape: f32[32,512], index: 3, kind: input, shape index: {}]   ;;  %s3635_s4 = inlined_call_operand.vmem [shape: f32[32,512], index: 4, kind: output, shape index: {0}]   ;;  %s3636_s5 = inlined_call_operand.vmem [shape: f32[32,512], index: 5, kind: output, shape index: {1}]  }
   0x1   :  { %s2175_s20 = smov 0  }
   0x2 LB: > { %s2187_s21 = sadd.s32 4294967295, %s2138_s20   ;;  %s2190_s22 = sadd.s32 1, %s2138_s20   ;;  %s2138_s20 = sphi %s2175_s20, %s3713_s20   ;;  %s2134_s19 = sphi %s2173_s19, %s3712_s19   ;;  %s2130_s18 = sphi %s2171_s18, %s3711_s18  }
   0x3   : > { %s20_s23 = ssub.s32 %s2138_s20, %s2190_s22  ;;  %s23_s24 = sadd.s32 1, %s2134_s19 }
   0x4   : > { %p21_p0 = scmp.eq.s32.totalorder %s20_s23, 0  ;;  %p30_p1 = scmp.ne.s32.totalorder %s2134_s19, %s2130_s18 }
   0x5   : > { %p31_p2 = scmp.eq.s32.totalorder %s2138_s20, 0  ;;  %p128_p3 = scmp.eq.s32.totalorder %s2187_s21, 1 }
   0x6   : > { %s2200_s25 = scalar_select %p21_p0, %s2134_s19, %s23_s24  }
   0x7   : > { %p2202_p4 = por %p31_p2, %p30_p1  ;;  %p2206_p5 = por %p128_p3, %p30_p1 }
   0x8   : > { %p1853_p6 = scmp.ge.s32.totalorder %s2138_s20, 2 }
   0xa   : > { %182 = sbr.rel (%p1853_p6) target bundleno = 113 (0x71), region = 24 }
   0xf   : > { %185 = sbr.rel (!%p2202_p4) target bundleno = 101 (0x65), region = 28  ;;  %s187_s28 = sand.u32 (%p2202_p4), 1, %s2134_s19  }
  0x10   : > { %s1929_s29 = sshll.u32 (%p2202_p4), %s2138_s20, 4  ;;  %s1958_s30 = smul.u32 (%p2202_p4), 656, %s187_s28 }
  0x11   : > { %s2218_s8 = scalar_lea.vmem (%p2202_p4), %s3631_s0, %s1929_s29 }
  0x12   : > { %v205_v0 = vld [vmem:[%s2218_s8] sm:$0xff] (%p2202_p4)  ;;  %v207_v1 = vld [vmem:[%s2218_s8 + $0x8] sm:$0xff] (%p2202_p4)  ;;  %s2223_s9 = scalar_lea.vmem (%p2202_p4), [#allocation2], %s1958_s30 }
  0x13   : > { %v209_v2 = vld [vmem:[%s2218_s8 + $0x20] sm:$0xff] (%p2202_p4)  ;;  %206 = vst [vmem:[%s2223_s9] sm:$0xff] (%p2202_p4), %v205_v0  ;;  %v211_v3 = vld [vmem:[%s2218_s8 + $0x28] sm:$0xff] (%p2202_p4) }
  0x14   : > { %208 = vst [vmem:[%s2223_s9 + $0x8] sm:$0xff] %v207_v1  ;;  %v213_v4 = vld [vmem:[%s2218_s8 + $0x40] sm:$0xff]  ;;  %v215_v5 = vld [vmem:[%s2218_s8 + $0x48] sm:$0xff] }
  0x15   : > { %210 = vst [vmem:[%s2223_s9 + $0x10] sm:$0xff] %v209_v2  ;;  %v217_v6 = vld [vmem:[%s2218_s8 + $0x60] sm:$0xff]  ;;  %v219_v7 = vld [vmem:[%s2218_s8 + $0x68] sm:$0xff] }
  0x16   : > { %212 = vst [vmem:[%s2223_s9 + $0x18] sm:$0xff] %v211_v3  ;;  %v221_v8 = vld [vmem:[%s2218_s8 + $0x80] sm:$0xff]  ;;  %v223_v9 = vld [vmem:[%s2218_s8 + $0x88] sm:$0xff] }
  0x17   : > { %214 = vst [vmem:[%s2223_s9 + $0x20] sm:$0xff] %v213_v4  ;;  %v225_v10 = vld [vmem:[%s2218_s8 + $0xa0] sm:$0xff]  ;;  %v227_v11 = vld [vmem:[%s2218_s8 + $0xa8] sm:$0xff] }
  0x18   : > { %216 = vst [vmem:[%s2223_s9 + $0x28] sm:$0xff] %v215_v5  ;;  %v229_v12 = vld [vmem:[%s2218_s8 + $0xc0] sm:$0xff]  ;;  %v231_v13 = vld [vmem:[%s2218_s8 + $0xc8] sm:$0xff] }
  0x19   : > { %218 = vst [vmem:[%s2223_s9 + $0x30] sm:$0xff] %v217_v6  ;;  %v233_v14 = vld [vmem:[%s2218_s8 + $0xe0] sm:$0xff]  ;;  %v235_v15 = vld [vmem:[%s2218_s8 + $0xe8] sm:$0xff] }
  0x1a   : > { %220 = vst [vmem:[%s2223_s9 + $0x38] sm:$0xff] %v219_v7  ;;  %v237_v16 = vld [vmem:[%s2218_s8 + $0x100] sm:$0xff]  ;;  %v239_v17 = vld [vmem:[%s2218_s8 + $0x108] sm:$0xff] }
  0x1b   : > { %222 = vst [vmem:[%s2223_s9 + $0x40] sm:$0xff] %v221_v8  ;;  %v241_v18 = vld [vmem:[%s2218_s8 + $0x120] sm:$0xff]  ;;  %v243_v19 = vld [vmem:[%s2218_s8 + $0x128] sm:$0xff] }
  0x1c   : > { %224 = vst [vmem:[%s2223_s9 + $0x48] sm:$0xff] %v223_v9  ;;  %v245_v20 = vld [vmem:[%s2218_s8 + $0x140] sm:$0xff]  ;;  %v247_v21 = vld [vmem:[%s2218_s8 + $0x148] sm:$0xff] }
  0x1d   : > { %226 = vst [vmem:[%s2223_s9 + $0x50] sm:$0xff] %v225_v10  ;;  %v249_v22 = vld [vmem:[%s2218_s8 + $0x160] sm:$0xff]  ;;  %v251_v23 = vld [vmem:[%s2218_s8 + $0x168] sm:$0xff] }
  0x1e   : > { %228 = vst [vmem:[%s2223_s9 + $0x58] sm:$0xff] %v227_v11  ;;  %v253_v24 = vld [vmem:[%s2218_s8 + $0x180] sm:$0xff]  ;;  %v255_v25 = vld [vmem:[%s2218_s8 + $0x188] sm:$0xff] }
  0x1f   : > { %230 = vst [vmem:[%s2223_s9 + $0x60] sm:$0xff] %v229_v12  ;;  %v257_v26 = vld [vmem:[%s2218_s8 + $0x1a0] sm:$0xff]  ;;  %v259_v27 = vld [vmem:[%s2218_s8 + $0x1a8] sm:$0xff] }
  0x20   : > { %232 = vst [vmem:[%s2223_s9 + $0x68] sm:$0xff] %v231_v13  ;;  %v261_v28 = vld [vmem:[%s2218_s8 + $0x1c0] sm:$0xff]  ;;  %v263_v29 = vld [vmem:[%s2218_s8 + $0x1c8] sm:$0xff] }
  0x21   : > { %234 = vst [vmem:[%s2223_s9 + $0x70] sm:$0xff] %v233_v14  ;;  %v265_v30 = vld [vmem:[%s2218_s8 + $0x1e0] sm:$0xff]  ;;  %v267_v31 = vld [vmem:[%s2218_s8 + $0x1e8] sm:$0xff] }
  0x22   : > { %236 = vst [vmem:[%s2223_s9 + $0x78] sm:$0xff] %v235_v15  ;;  %v269_v32 = vld [vmem:[%s2218_s8 + $0x200] sm:$0xff]  ;;  %v271_v33 = vld [vmem:[%s2218_s8 + $0x208] sm:$0xff] }
  0x23   : > { %238 = vst [vmem:[%s2223_s9 + $0x80] sm:$0xff] %v237_v16  ;;  %v273_v34 = vld [vmem:[%s2218_s8 + $0x220] sm:$0xff]  ;;  %v275_v35 = vld [vmem:[%s2218_s8 + $0x228] sm:$0xff] }
  0x24   : > { %240 = vst [vmem:[%s2223_s9 + $0x88] sm:$0xff] %v239_v17  ;;  %v277_v36 = vld [vmem:[%s2218_s8 + $0x240] sm:$0xff]  ;;  %v279_v37 = vld [vmem:[%s2218_s8 + $0x248] sm:$0xff] }
  0x25   : > { %242 = vst [vmem:[%s2223_s9 + $0x90] sm:$0xff] %v241_v18  ;;  %v281_v38 = vld [vmem:[%s2218_s8 + $0x260] sm:$0xff]  ;;  %v283_v39 = vld [vmem:[%s2218_s8 + $0x268] sm:$0xff] }
  0x26   : > { %244 = vst [vmem:[%s2223_s9 + $0x98] sm:$0xff] %v243_v19  ;;  %v285_v40 = vld [vmem:[%s2218_s8 + $0x280] sm:$0xff]  ;;  %v287_v41 = vld [vmem:[%s2218_s8 + $0x288] sm:$0xff] }
  0x27   : > { %246 = vst [vmem:[%s2223_s9 + $0xa0] sm:$0xff] %v245_v20  ;;  %v289_v42 = vld [vmem:[%s2218_s8 + $0x2a0] sm:$0xff]  ;;  %v291_v43 = vld [vmem:[%s2218_s8 + $0x2a8] sm:$0xff] }
  0x28   : > { %248 = vst [vmem:[%s2223_s9 + $0xa8] sm:$0xff] %v247_v21  ;;  %v293_v44 = vld [vmem:[%s2218_s8 + $0x2c0] sm:$0xff]  ;;  %v295_v45 = vld [vmem:[%s2218_s8 + $0x2c8] sm:$0xff] }
  0x29   : > { %250 = vst [vmem:[%s2223_s9 + $0xb0] sm:$0xff] %v249_v22  ;;  %v297_v46 = vld [vmem:[%s2218_s8 + $0x2e0] sm:$0xff]  ;;  %v299_v47 = vld [vmem:[%s2218_s8 + $0x2e8] sm:$0xff] }
  0x2a   : > { %252 = vst [vmem:[%s2223_s9 + $0xb8] sm:$0xff] %v251_v23  ;;  %v301_v48 = vld [vmem:[%s2218_s8 + $0x300] sm:$0xff]  ;;  %v303_v49 = vld [vmem:[%s2218_s8 + $0x308] sm:$0xff] }
  0x2b   : > { %254 = vst [vmem:[%s2223_s9 + $0xc0] sm:$0xff] %v253_v24  ;;  %v305_v50 = vld [vmem:[%s2218_s8 + $0x320] sm:$0xff]  ;;  %v307_v51 = vld [vmem:[%s2218_s8 + $0x328] sm:$0xff] }
  0x2c   : > { %256 = vst [vmem:[%s2223_s9 + $0xc8] sm:$0xff] %v255_v25  ;;  %v309_v52 = vld [vmem:[%s2218_s8 + $0x340] sm:$0xff]  ;;  %v311_v53 = vld [vmem:[%s2218_s8 + $0x348] sm:$0xff] }
  0x2d   : > { %258 = vst [vmem:[%s2223_s9 + $0xd0] sm:$0xff] %v257_v26  ;;  %v313_v54 = vld [vmem:[%s2218_s8 + $0x360] sm:$0xff]  ;;  %v315_v55 = vld [vmem:[%s2218_s8 + $0x368] sm:$0xff] }
  0x2e   : > { %260 = vst [vmem:[%s2223_s9 + $0xd8] sm:$0xff] %v259_v27  ;;  %v317_v56 = vld [vmem:[%s2218_s8 + $0x380] sm:$0xff]  ;;  %v319_v57 = vld [vmem:[%s2218_s8 + $0x388] sm:$0xff] }
  0x2f   : > { %262 = vst [vmem:[%s2223_s9 + $0xe0] sm:$0xff] %v261_v28  ;;  %v321_v58 = vld [vmem:[%s2218_s8 + $0x3a0] sm:$0xff]  ;;  %v323_v59 = vld [vmem:[%s2218_s8 + $0x3a8] sm:$0xff] }
  0x30   : > { %264 = vst [vmem:[%s2223_s9 + $0xe8] sm:$0xff] %v263_v29  ;;  %v325_v60 = vld [vmem:[%s2218_s8 + $0x3c0] sm:$0xff]  ;;  %v327_v61 = vld [vmem:[%s2218_s8 + $0x3c8] sm:$0xff] }
  0x31   : > { %266 = vst [vmem:[%s2223_s9 + $0xf0] sm:$0xff] %v265_v30  ;;  %v329_v62 = vld [vmem:[%s2218_s8 + $0x3e0] sm:$0xff]  ;;  %v331_v63 = vld [vmem:[%s2218_s8 + $0x3e8] sm:$0xff] }
  0x32   : > { %268 = vst [vmem:[%s2223_s9 + $0xf8] sm:$0xff] %v267_v31  ;;  %v333_v0 = vld [vmem:[%s2218_s8 + $0x400] sm:$0xff]  ;;  %v335_v1 = vld [vmem:[%s2218_s8 + $0x408] sm:$0xff] }
  0x33   : > { %270 = vst [vmem:[%s2223_s9 + $0x100] sm:$0xff] %v269_v32  ;;  %v337_v2 = vld [vmem:[%s2218_s8 + $0x420] sm:$0xff]  ;;  %v339_v3 = vld [vmem:[%s2218_s8 + $0x428] sm:$0xff] }
  0x34   : > { %272 = vst [vmem:[%s2223_s9 + $0x108] sm:$0xff] %v271_v33  ;;  %v341_v4 = vld [vmem:[%s2218_s8 + $0x440] sm:$0xff]  ;;  %v343_v5 = vld [vmem:[%s2218_s8 + $0x448] sm:$0xff] }
  0x35   : > { %274 = vst [vmem:[%s2223_s9 + $0x110] sm:$0xff] %v273_v34  ;;  %v345_v6 = vld [vmem:[%s2218_s8 + $0x460] sm:$0xff]  ;;  %v347_v7 = vld [vmem:[%s2218_s8 + $0x468] sm:$0xff] }
  0x36   : > { %276 = vst [vmem:[%s2223_s9 + $0x118] sm:$0xff] %v275_v35  ;;  %v349_v8 = vld [vmem:[%s2218_s8 + $0x480] sm:$0xff]  ;;  %v351_v9 = vld [vmem:[%s2218_s8 + $0x488] sm:$0xff] }
  0x37   : > { %278 = vst [vmem:[%s2223_s9 + $0x120] sm:$0xff] %v277_v36  ;;  %v353_v10 = vld [vmem:[%s2218_s8 + $0x4a0] sm:$0xff]  ;;  %v355_v11 = vld [vmem:[%s2218_s8 + $0x4a8] sm:$0xff] }
  0x38   : > { %280 = vst [vmem:[%s2223_s9 + $0x128] sm:$0xff] %v279_v37  ;;  %v357_v12 = vld [vmem:[%s2218_s8 + $0x4c0] sm:$0xff]  ;;  %v359_v13 = vld [vmem:[%s2218_s8 + $0x4c8] sm:$0xff] }
  0x39   : > { %282 = vst [vmem:[%s2223_s9 + $0x130] sm:$0xff] %v281_v38  ;;  %v361_v14 = vld [vmem:[%s2218_s8 + $0x4e0] sm:$0xff]  ;;  %v363_v15 = vld [vmem:[%s2218_s8 + $0x4e8] sm:$0xff] }
  0x3a   : > { %284 = vst [vmem:[%s2223_s9 + $0x138] sm:$0xff] %v283_v39  ;;  %v365_v16 = vld [vmem:[%s2218_s8 + $0x500] sm:$0xff]  ;;  %v367_v17 = vld [vmem:[%s2218_s8 + $0x508] sm:$0xff] }
  0x3b   : > { %286 = vst [vmem:[%s2223_s9 + $0x140] sm:$0xff] %v285_v40 }
  0x3c   : > { %288 = vst [vmem:[%s2223_s9 + $0x148] sm:$0xff] %v287_v41 }
  0x3d   : > { %290 = vst [vmem:[%s2223_s9 + $0x150] sm:$0xff] %v289_v42 }
  0x3e   : > { %292 = vst [vmem:[%s2223_s9 + $0x158] sm:$0xff] %v291_v43 }
  0x3f   : > { %294 = vst [vmem:[%s2223_s9 + $0x160] sm:$0xff] %v293_v44 }
  0x40   : > { %296 = vst [vmem:[%s2223_s9 + $0x168] sm:$0xff] %v295_v45 }
  0x41   : > { %298 = vst [vmem:[%s2223_s9 + $0x170] sm:$0xff] %v297_v46 }
  0x42   : > { %300 = vst [vmem:[%s2223_s9 + $0x178] sm:$0xff] %v299_v47 }
  0x43   : > { %302 = vst [vmem:[%s2223_s9 + $0x180] sm:$0xff] %v301_v48 }
  0x44   : > { %304 = vst [vmem:[%s2223_s9 + $0x188] sm:$0xff] %v303_v49 }
  0x45   : > { %306 = vst [vmem:[%s2223_s9 + $0x190] sm:$0xff] %v305_v50 }
  0x46   : > { %308 = vst [vmem:[%s2223_s9 + $0x198] sm:$0xff] %v307_v51 }
  0x47   : > { %310 = vst [vmem:[%s2223_s9 + $0x1a0] sm:$0xff] %v309_v52 }
  0x48   : > { %312 = vst [vmem:[%s2223_s9 + $0x1a8] sm:$0xff] %v311_v53 }
  0x49   : > { %314 = vst [vmem:[%s2223_s9 + $0x1b0] sm:$0xff] %v313_v54 }
  0x4a   : > { %316 = vst [vmem:[%s2223_s9 + $0x1b8] sm:$0xff] %v315_v55 }
  0x4b   : > { %318 = vst [vmem:[%s2223_s9 + $0x1c0] sm:$0xff] %v317_v56 }
  0x4c   : > { %320 = vst [vmem:[%s2223_s9 + $0x1c8] sm:$0xff] %v319_v57 }
  0x4d   : > { %322 = vst [vmem:[%s2223_s9 + $0x1d0] sm:$0xff] %v321_v58 }
  0x4e   : > { %324 = vst [vmem:[%s2223_s9 + $0x1d8] sm:$0xff] %v323_v59 }
  0x4f   : > { %326 = vst [vmem:[%s2223_s9 + $0x1e0] sm:$0xff] %v325_v60 }
  0x50   : > { %328 = vst [vmem:[%s2223_s9 + $0x1e8] sm:$0xff] %v327_v61 }
  0x51   : > { %330 = vst [vmem:[%s2223_s9 + $0x1f0] sm:$0xff] %v329_v62 }
  0x52   : > { %332 = vst [vmem:[%s2223_s9 + $0x1f8] sm:$0xff] %v331_v63 }
  0x53   : > { %334 = vst [vmem:[%s2223_s9 + $0x200] sm:$0xff] %v333_v0 }
  0x54   : > { %336 = vst [vmem:[%s2223_s9 + $0x208] sm:$0xff] %v335_v1 }
  0x55   : > { %338 = vst [vmem:[%s2223_s9 + $0x210] sm:$0xff] %v337_v2 }
  0x56   : > { %340 = vst [vmem:[%s2223_s9 + $0x218] sm:$0xff] %v339_v3 }
  0x57   : > { %342 = vst [vmem:[%s2223_s9 + $0x220] sm:$0xff] %v341_v4 }
  0x58   : > { %344 = vst [vmem:[%s2223_s9 + $0x228] sm:$0xff] %v343_v5 }
  0x59   : > { %346 = vst [vmem:[%s2223_s9 + $0x230] sm:$0xff] %v345_v6 }
  0x5a   : > { %348 = vst [vmem:[%s2223_s9 + $0x238] sm:$0xff] %v347_v7 }
  0x5b   : > { %350 = vst [vmem:[%s2223_s9 + $0x240] sm:$0xff] %v349_v8 }
  0x5c   : > { %352 = vst [vmem:[%s2223_s9 + $0x248] sm:$0xff] %v351_v9 }
  0x5d   : > { %354 = vst [vmem:[%s2223_s9 + $0x250] sm:$0xff] %v353_v10 }
  0x5e   : > { %356 = vst [vmem:[%s2223_s9 + $0x258] sm:$0xff] %v355_v11 }
  0x5f   : > { %358 = vst [vmem:[%s2223_s9 + $0x260] sm:$0xff] %v357_v12 }
  0x60   : > { %360 = vst [vmem:[%s2223_s9 + $0x268] sm:$0xff] %v359_v13 }
  0x61   : > { %362 = vst [vmem:[%s2223_s9 + $0x270] sm:$0xff] %v361_v14 }
  0x62   : > { %364 = vst [vmem:[%s2223_s9 + $0x278] sm:$0xff] %v363_v15 }
  0x63   : > { %366 = vst [vmem:[%s2223_s9 + $0x280] sm:$0xff] %v365_v16 }
  0x64   : > { %368 = vst [vmem:[%s2223_s9 + $0x288] sm:$0xff] %v367_v17 }
  0x65 PF: > { %374 = sbr.rel (!%p2202_p4) target bundleno = 113 (0x71), region = 51  ;;  %s376_s10 = sand.u32 (%p2202_p4), 1, %s2134_s19  }
  0x66   : > { %s1930_s11 = sshll.u32 (%p2202_p4), %s2138_s20, 4  ;;  %s1856_s12 = sshll.u32 (%p2202_p4), %s376_s10, 6 }
  0x67   : > { %s381_s15 = scalar_lea.vmem (%p2202_p4), %s3634_s3, %s1930_s11  ;;  %s378_s16 = scalar_lea.vmem (%p2202_p4), [#allocation3], %s1856_s12 }
  0x68   : > { %v394_v18 = vld [vmem:[%s381_s15] sm:$0xff] (%p2202_p4)  ;;  %v396_v19 = vld [vmem:[%s381_s15 + $0x8] sm:$0xff] (%p2202_p4) }
  0x69   : > { %v398_v20 = vld [vmem:[%s381_s15 + $0x20] sm:$0xff] (%p2202_p4)  ;;  %395 = vst [vmem:[%s378_s16] sm:$0xff] (%p2202_p4), %v394_v18  ;;  %v400_v21 = vld [vmem:[%s381_s15 + $0x28] sm:$0xff] (%p2202_p4) }
  0x6a   : > { %397 = vst [vmem:[%s378_s16 + $0x8] sm:$0xff] %v396_v19  ;;  %v402_v22 = vld [vmem:[%s381_s15 + $0x40] sm:$0xff]  ;;  %v404_v23 = vld [vmem:[%s381_s15 + $0x48] sm:$0xff] }
  0x6b   : > { %399 = vst [vmem:[%s378_s16 + $0x10] sm:$0xff] %v398_v20  ;;  %v406_v24 = vld [vmem:[%s381_s15 + $0x60] sm:$0xff]  ;;  %v408_v25 = vld [vmem:[%s381_s15 + $0x68] sm:$0xff] }
  0x6c   : > { %401 = vst [vmem:[%s378_s16 + $0x18] sm:$0xff] %v400_v21 }
  0x6d   : > { %403 = vst [vmem:[%s378_s16 + $0x20] sm:$0xff] %v402_v22 }
  0x6e   : > { %405 = vst [vmem:[%s378_s16 + $0x28] sm:$0xff] %v404_v23 }
  0x6f   : > { %407 = vst [vmem:[%s378_s16 + $0x30] sm:$0xff] %v406_v24 }
  0x70   : > { %409 = vst [vmem:[%s378_s16 + $0x38] sm:$0xff] %v408_v25 }
  0x71 PF: > { %p1859_p7 = scmp.ge.s32.totalorder %s2138_s20, 1  ;;  %p414_p8 = scmp.lt.s32.totalorder %s2138_s20, 3 }
  0x73   : > { %p415_p9 = pnand %p1859_p7, %p414_p8 }
  0x75   : > { %418 = sbr.rel (%p415_p9) target bundleno = 533 (0x215), region = 74 }
  0x7a   : > { %s421_s17 = sand.u32 1, %s2130_s18   ;;  %v596_v26 = vld [vmem:[%s3633_s2] sm:$0xff]  ;;  %v2140_v27 = vmov 0   ;;  %v598_v28 = vld [vmem:[%s3633_s2 + $0x10] sm:$0xff]  ;;  %vm741_vm0 = vcmask 1043456   ;;  %vm692_vm1 = vcmask 556032  }
  0x7b   : > { %s1959_s26 = smul.u32 656, %s421_s17  ;;  %1985 = vset.pattern.permute.xlu0 %v2140_v27  ;;  %1986 = vset.pattern.permute.xlu1 %v2140_v27  ;;  %v2429_v47 = vld [vmem:[%s3632_s1 + $0x10] sm:$0xff]  ;;  %v2434_v48 = vld [vmem:[%s3632_s1 + $0xe8] sm:$0xff]  ;;  %v599_v53 = vld [vmem:[%s3633_s2 + $0x18] sm:$0xff]  ;;  %s3237_s7 = sshll.u32 %s421_s17, 6 }
  0x7c   : > { %614 = vperm.xlu0 %1985, %v596_v26   ;;  %624 = vperm.xlu1 %1986, %v598_v28   ;;  %v597_v50 = vld [vmem:[%s3633_s2 + $0x8] sm:$0xff]  ;;  %v2463_v61 = vld [vmem:[%s3632_s1 + $0x100] sm:$0xff]  ;;  %v602_v62 = vld [vmem:[%s3633_s2 + $0x30] sm:$0xff]  ;;  %s3299_s18 = scalar_lea.vmem [#allocation3], %s3237_s7  ;;  %s3369_s17 = scalar_lea.vmem [#allocation5], %s3237_s7 }
  0x7d   : > { %1987 = vset.pattern.permute.xlu2 %v2140_v27  ;;  %s2404_s20 = scalar_lea.vmem [#allocation2], %s1959_s26  ;;  %v2457_v59 = vld [vmem:[%s3632_s1 + $0x28] sm:$0xff]  ;;  %v603_v1 = vld [vmem:[%s3633_s2 + $0x38] sm:$0xff]  ;;  %v2485_v7 = vld [vmem:[%s3632_s1 + $0xc0] sm:$0xff]  ;;  %s3567_s8 = scalar_lea.vmem [#allocation4], %s3237_s7 }
  0x7e   : > { %v544_v29 = vld [vmem:[%s2404_s20 + $0xf0] sm:$0xff]  ;;  %v594_v30 = vld [vmem:[%s2404_s20 + $0x280] sm:$0xf]  ;;  %v577_v49 = vld [vmem:[%s2404_s20 + $0x1f8] sm:$0xff]  ;;  %s1931_s9 = sshll.u32 (%p2206_p5), %s2187_s21, 4 }
  0x7f   : > { %v542_v31 = vld [vmem:[%s2404_s20 + $0xe0] sm:$0xff]  ;;  %1933 = vmatpush.msra.mxu1 %v544_v29  ;;  %1863 = vmatpush.msk.msra.mxu2 %vm741_vm0, %v594_v30  ;;  %v592_v32 = vld [vmem:[%s2404_s20 + $0x270] sm:$0xff]  ;;  %v575_v52 = vld [vmem:[%s2404_s20 + $0x1e8] sm:$0xff]  ;;  %s1679_s12 = scalar_lea.vmem (%p2206_p5), %s3635_s4, %s1931_s9 }
  0x80   : > { %1949 = vmatpush.msk.msra.mxu3 %vm741_vm0, %v594_v30  ;;  %748 = vmatpush.msra.mxu0 %v544_v29  ;;  %v540_v33 = vld [vmem:[%s2404_s20 + $0xd0] sm:$0xff]  ;;  %v590_v34 = vld [vmem:[%s2404_s20 + $0x260] sm:$0xff]  ;;  %v573_v55 = vld [vmem:[%s2404_s20 + $0x1d8] sm:$0xff] }
  0x81   : > { %1934 = vmatpush.msra.mxu1 %v542_v31  ;;  %886 = vmatpush.msra.mxu2 %v592_v32  ;;  %v538_v35 = vld [vmem:[%s2404_s20 + $0xc0] sm:$0xff]  ;;  %v588_v36 = vld [vmem:[%s2404_s20 + $0x250] sm:$0xff]  ;;  %v545_v56 = vld [vmem:[%s2404_s20 + $0xf8] sm:$0xff] }
  0x82   : > { %1950 = vmatpush.msra.mxu3 %v592_v32  ;;  %749 = vmatpush.msra.mxu0 %v542_v31  ;;  %v536_v37 = vld [vmem:[%s2404_s20 + $0xb0] sm:$0xff]  ;;  %v586_v38 = vld [vmem:[%s2404_s20 + $0x240] sm:$0xff]  ;;  %v571_v58 = vld [vmem:[%s2404_s20 + $0x1c8] sm:$0xff] }
  0x83   : > { %1935 = vmatpush.msra.mxu1 %v540_v33  ;;  %887 = vmatpush.msra.mxu2 %v590_v34  ;;  %v534_v39 = vld [vmem:[%s2404_s20 + $0xa0] sm:$0xff]  ;;  %v584_v40 = vld [vmem:[%s2404_s20 + $0x230] sm:$0xff]  ;;  %v543_v0 = vld [vmem:[%s2404_s20 + $0xe8] sm:$0xff] }
  0x84   : > { %1951 = vmatpush.msra.mxu3 %v590_v34  ;;  %750 = vmatpush.msra.mxu0 %v540_v33  ;;  %v532_v41 = vld [vmem:[%s2404_s20 + $0x90] sm:$0xff]  ;;  %v582_v42 = vld [vmem:[%s2404_s20 + $0x220] sm:$0xff]  ;;  %v569_v3 = vld [vmem:[%s2404_s20 + $0x1b8] sm:$0xff] }
  0x85   : > { %1936 = vmatpush.msra.mxu1 %v538_v35  ;;  %888 = vmatpush.msra.mxu2 %v588_v36  ;;  %v530_v43 = vld [vmem:[%s2404_s20 + $0x80] sm:$0xff]  ;;  %v580_v44 = vld [vmem:[%s2404_s20 + $0x210] sm:$0xff]  ;;  %v541_v4 = vld [vmem:[%s2404_s20 + $0xd8] sm:$0xff] }
  0x86   : > { %1952 = vmatpush.msra.mxu3 %v588_v36  ;;  %751 = vmatpush.msra.mxu0 %v538_v35  ;;  %v528_v45 = vld [vmem:[%s2404_s20 + $0x70] sm:$0xff]  ;;  %v578_v46 = vld [vmem:[%s2404_s20 + $0x200] sm:$0xff]  ;;  %v567_v6 = vld [vmem:[%s2404_s20 + $0x1a8] sm:$0xff] }
  0x87   : > { %1937 = vmatpush.msra.mxu1 %v536_v37  ;;  %889 = vmatpush.msra.mxu2 %v586_v38  ;;  %v526_v51 = vld [vmem:[%s2404_s20 + $0x60] sm:$0xff]  ;;  %v524_v54 = vld [vmem:[%s2404_s20 + $0x50] sm:$0xff]  ;;  %v2501_v11 = vld [vmem:[%s3632_s1 + $0x118] sm:$0xff] }
  0x88   : > { %1953 = vmatpush.msra.mxu3 %v586_v38  ;;  %752 = vmatpush.msra.mxu0 %v536_v37  ;;  %v522_v57 = vld [vmem:[%s2404_s20 + $0x40] sm:$0xff]  ;;  %v520_v60 = vld [vmem:[%s2404_s20 + $0x30] sm:$0xff]  ;;  %v595_v12 = vld [vmem:[%s2404_s20 + $0x288] sm:$0xf] }
  0x89   : > { %1938 = vmatpush.msra.mxu1 %v534_v39  ;;  %890 = vmatpush.msra.mxu2 %v584_v40  ;;  %v518_v63 = vld [vmem:[%s2404_s20 + $0x20] sm:$0xff]  ;;  %v516_v2 = vld [vmem:[%s2404_s20 + $0x10] sm:$0xff]  ;;  %v609_v13 = vld [vmem:[%s3633_s2 + $0x68] sm:$0xff] }
  0x8a   : > { %1954 = vmatpush.msra.mxu3 %v584_v40  ;;  %753 = vmatpush.msra.mxu0 %v534_v39  ;;  %v514_v5 = vld [vmem:[%s2404_s20] sm:$0xff]  ;;  %v576_v8 = vld [vmem:[%s2404_s20 + $0x1f0] sm:$0xff]  ;;  %v593_v16 = vld [vmem:[%s2404_s20 + $0x278] sm:$0xff] }
  0x8b   : > { %1939 = vmatpush.msra.mxu1 %v532_v41  ;;  %891 = vmatpush.msra.mxu2 %v582_v42  ;;  %v2491_v9 = vld [vmem:[%s3632_s1] sm:$0xff]  ;;  %v610_v15 = vld [vmem:[%s3633_s2 + $0x70] sm:$0xff]  ;;  %v539_v17 = vld [vmem:[%s2404_s20 + $0xc8] sm:$0xff] }
  0x8c   : > { %1955 = vmatpush.msra.mxu3 %v582_v42  ;;  %754 = vmatpush.msra.mxu0 %v532_v41  ;;  %v2496_v10 = vld [vmem:[%s3632_s1 + $0x40] sm:$0xff]  ;;  %v565_v19 = vld [vmem:[%s2404_s20 + $0x198] sm:$0xff]  ;;  %v591_v21 = vld [vmem:[%s2404_s20 + $0x268] sm:$0xff] }
  0x8d   : > { %1940 = vmatpush.msra.mxu1 %v530_v43  ;;  %892 = vmatpush.msra.mxu2 %v580_v44  ;;  %v574_v14 = vld [vmem:[%s2404_s20 + $0x1e0] sm:$0xff]  ;;  %v572_v18 = vld [vmem:[%s2404_s20 + $0x1d0] sm:$0xff]  ;;  %v537_v20 = vld [vmem:[%s2404_s20 + $0xb8] sm:$0xff] }
  0x8e   : > { %1956 = vmatpush.msra.mxu3 %v580_v44  ;;  %755 = vmatpush.msra.mxu0 %v530_v43  ;;  %v2527_v22 = vld [vmem:[%s3632_s1 + $0xd8] sm:$0xff]  ;;  %v570_v25 = vld [vmem:[%s2404_s20 + $0x1c0] sm:$0xff]  ;;  %v568_v29 = vld [vmem:[%s2404_s20 + $0x1b0] sm:$0xff] }
  0x8f   : > { %1941 = vmatpush.msra.mxu1 %v528_v45  ;;  %893 = vmatpush.msra.mxu2 %v578_v46  ;;  %v563_v23 = vld [vmem:[%s2404_s20 + $0x188] sm:$0xff]  ;;  %v2544_v27 = vld [vmem:[%s3632_s1 + $0x130] sm:$0xff]  ;;  %v604_v28 = vld [vmem:[%s3633_s2 + $0x40] sm:$0xff] }
  0x90   : > { %1957 = vmatpush.msra.mxu3 %v578_v46  ;;  %1864 = vmatmul.msk.f32.vlgmr.msra.gmra.mxu2 %vm692_vm1, %v2429_v47  ;;  %v2533_v24 = vld [vmem:[%s3632_s1 + $0x18] sm:$0xff]  ;;  %v600_v31 = vld [vmem:[%s3633_s2 + $0x20] sm:$0xff]  ;;  %v605_v32 = vld [vmem:[%s3633_s2 + $0x48] sm:$0xff] }
  0x91   : > { %1873 = vmatmul.msk.f32.vlgmr.msra.gmra.mxu3 %vm692_vm1, %v2434_v48  ;;  %1008 = vmatpush.msrb.mxu2 %v577_v49  ;;  %v2539_v26 = vld [vmem:[%s3632_s1 + $0x58] sm:$0xff]  ;;  %v566_v33 = vld [vmem:[%s2404_s20 + $0x1a0] sm:$0xff]  ;;  %v564_v36 = vld [vmem:[%s2404_s20 + $0x190] sm:$0xff] }
  0x92   : > { %619 = vperm.xlu0 %1985, %v597_v50   ;;  %756 = vmatpush.msra.mxu0 %v528_v45  ;;  %v535_v30 = vld [vmem:[%s2404_s20 + $0xa8] sm:$0xff]  ;;  %v533_v34 = vld [vmem:[%s2404_s20 + $0x98] sm:$0xff]  ;;  %v2571_v38 = vld [vmem:[%s3632_s1 + $0xf0] sm:$0xff] }
  0x93   : > { %1942 = vmatpush.msra.mxu1 %v526_v51  ;;  %1009 = vmatpush.msrb.mxu2 %v575_v52  ;;  %v561_v35 = vld [vmem:[%s2404_s20 + $0x178] sm:$0xff]  ;;  %v531_v39 = vld [vmem:[%s2404_s20 + $0x88] sm:$0xff]  ;;  %v2577_v40 = vld [vmem:[%s3632_s1 + $0x30] sm:$0xff] }
  0x94   : > { %757 = vmatpush.msra.mxu0 %v526_v51  ;;  %629 = vperm.xlu1 %1986, %v599_v53   ;;  %v589_v37 = vld [vmem:[%s2404_s20 + $0x258] sm:$0xff]  ;;  %v559_v41 = vld [vmem:[%s2404_s20 + $0x168] sm:$0xff]  ;;  %v2583_v42 = vld [vmem:[%s3632_s1 + $0x70] sm:$0xff] }
  0x95   : > { %1943 = vmatpush.msra.mxu1 %v524_v54  ;;  %1010 = vmatpush.msrb.mxu2 %v573_v55  ;;  %v2588_v43 = vld [vmem:[%s3632_s1 + $0x148] sm:$0xff]  ;;  %v562_v45 = vld [vmem:[%s2404_s20 + $0x180] sm:$0xff]  ;;  %v560_v52 = vld [vmem:[%s2404_s20 + $0x170] sm:$0xff] }
  0x96   : > { %758 = vmatpush.msra.mxu0 %v524_v54  ;;  %943 = vmatpush.msrb.mxu3 %v545_v56  ;;  %v529_v44 = vld [vmem:[%s2404_s20 + $0x78] sm:$0xff]  ;;  %v527_v50 = vld [vmem:[%s2404_s20 + $0x68] sm:$0xff] }
  0x97   : > { %1944 = vmatpush.msra.mxu1 %v522_v57  ;;  %1011 = vmatpush.msrb.mxu2 %v571_v58  ;;  %v601_v46 = vld [vmem:[%s3633_s2 + $0x28] sm:$0xff]  ;;  %v607_v53 = vld [vmem:[%s3633_s2 + $0x58] sm:$0xff] }
  0x98   : > { %759 = vmatpush.msra.mxu0 %v522_v57  ;;  %1865 = vmatmul.msk.f32.gmra.mxu2 %vm692_vm1, %v2457_v59  ;;  %v557_v49 = vld [vmem:[%s2404_s20 + $0x158] sm:$0xff]  ;;  %v587_v51 = vld [vmem:[%s2404_s20 + $0x248] sm:$0xff] }
  0x99   : > { %1945 = vmatpush.msra.mxu1 %v520_v60  ;;  %1874 = vmatmul.msk.f32.gmra.mxu3 %vm692_vm1, %v2463_v61  ;;  %v525_v54 = vld [vmem:[%s2404_s20 + $0x58] sm:$0xff]  ;;  %v555_v55 = vld [vmem:[%s2404_s20 + $0x148] sm:$0xff] }
  0x9a   : > { %644 = vperm.xlu0 %1985, %v602_v62   ;;  %760 = vmatpush.msra.mxu0 %v520_v60  ;;  %v2613_v56 = vld [vmem:[%s3632_s1 + $0x108] sm:$0xff] }
  0x9b   : > { %1946 = vmatpush.msra.mxu1 %v518_v63  ;;  %944 = vmatpush.msrb.mxu3 %v543_v0  ;;  %v585_v57 = vld [vmem:[%s2404_s20 + $0x238] sm:$0xff]  ;;  %v523_v60 = vld [vmem:[%s2404_s20 + $0x48] sm:$0xff] }
  0x9c   : > { %761 = vmatpush.msra.mxu0 %v518_v63  ;;  %649 = vperm.xlu1 %1986, %v603_v1   ;;  %v2619_v58 = vld [vmem:[%s3632_s1 + $0x48] sm:$0xff]  ;;  %v2630_v63 = vld [vmem:[%s3632_s1 + $0x160] sm:$0xff] }
  0x9d   : > { %1947 = vmatpush.msra.mxu1 %v516_v2  ;;  %1012 = vmatpush.msrb.mxu2 %v569_v3  ;;  %v2625_v62 = vld [vmem:[%s3632_s1 + $0x88] sm:$0xff]  ;;  %v558_v1 = vld [vmem:[%s2404_s20 + $0x160] sm:$0xff] }
  0x9e   : > { %762 = vmatpush.msra.mxu0 %v516_v2  ;;  %945 = vmatpush.msrb.mxu3 %v541_v4  ;;  %v521_v0 = vld [vmem:[%s2404_s20 + $0x38] sm:$0xff]  ;;  %v608_v2 = vld [vmem:[%s3633_s2 + $0x60] sm:$0xff]  ;;  %v519_v4 = vld [vmem:[%s2404_s20 + $0x28] sm:$0xff] }
  0x9f   : > { %1948 = vmatpush.msra.mxu1 %v514_v5  ;;  %1013 = vmatpush.msrb.mxu2 %v567_v6  ;;  %v553_v3 = vld [vmem:[%s2404_s20 + $0x138] sm:$0xff]  ;;  %v551_v6 = vld [vmem:[%s2404_s20 + $0x128] sm:$0xff] }
  0xa0   : > { %788 = vmatmul.f32.vlgmr.msra.gmra.mxu1 %v2485_v7  ;;  %763 = vmatpush.msra.mxu0 %v514_v5  ;;  %v556_v5 = vld [vmem:[%s2404_s20 + $0x150] sm:$0xff] }
  0xa1   : > { %813 = vmatpush.msrb.mxu1 %v576_v8  ;;  %764 = vmatmul.f32.vlgmr.msra.gmra.mxu0 %v2491_v9  ;;  %v583_v8 = vld [vmem:[%s2404_s20 + $0x228] sm:$0xff] }
  0xa2   : > { %1866 = vmatmul.msk.f32.gmra.mxu2 %vm692_vm1, %v2496_v10  ;;  %1875 = vmatmul.msk.f32.gmra.mxu3 %vm692_vm1, %v2501_v11 }
  0xa3   : > { %1880 = vmatpush.msk.msrb.mxu0 %vm741_vm0, %v595_v12  ;;  %679 = vperm.xlu0 %1985, %v609_v13   ;;  %v517_v12 = vld [vmem:[%s2404_s20 + $0x18] sm:$0xff]  ;;  %v554_v13 = vld [vmem:[%s2404_s20 + $0x140] sm:$0xff] }
  0xa4   : > { %814 = vmatpush.msrb.mxu1 %v574_v14  ;;  %684 = vperm.xlu1 %1986, %v610_v15   ;;  %v2653_v14 = vld [vmem:[%s3632_s1 + $0x120] sm:$0xff]  ;;  %v549_v15 = vld [vmem:[%s2404_s20 + $0x118] sm:$0xff] }
  0xa5   : > { %1081 = vmatpush.msrb.mxu0 %v593_v16  ;;  %946 = vmatpush.msrb.mxu3 %v539_v17  ;;  %v478_v16 = vld [vmem:[%s3632_s1 + $0x60] sm:$0xff]  ;;  %v515_v17 = vld [vmem:[%s2404_s20 + $0x8] sm:$0xff] }
  0xa6   : > { %815 = vmatpush.msrb.mxu1 %v572_v18  ;;  %1014 = vmatpush.msrb.mxu2 %v565_v19  ;;  %v2663_v18 = vld [vmem:[%s3632_s1 + $0xa0] sm:$0xff]  ;;  %v2668_v19 = vld [vmem:[%s3632_s1 + $0x178] sm:$0xff] }
  0xa7   : > { %947 = vmatpush.msrb.mxu3 %v537_v20  ;;  %1082 = vmatpush.msrb.mxu0 %v591_v21  ;;  %v552_v20 = vld [vmem:[%s2404_s20 + $0x130] sm:$0xff]  ;;  %v581_v21 = vld [vmem:[%s2404_s20 + $0x218] sm:$0xff] }
  0xa8   : > { %791 = vmatmul.f32.gmra.mxu1 %v2527_v22  ;;  %1015 = vmatpush.msrb.mxu2 %v563_v23  ;;  %v611_v23 = vld [vmem:[%s3633_s2 + $0x78] sm:$0xff] }
  0xa9   : > { %767 = vmatmul.f32.gmra.mxu0 %v2533_v24  ;;  %816 = vmatpush.msrb.mxu1 %v570_v25  ;;  %v547_v25 = vld [vmem:[%s2404_s20 + $0x108] sm:$0xff] }
  0xaa   : > { %1867 = vmatmul.msk.f32.gmra.mxu2 %vm692_vm1, %v2539_v26  ;;  %1876 = vmatmul.msk.f32.gmra.mxu3 %vm692_vm1, %v2544_v27 }
  0xab   : > { %654 = vperm.xlu0 %1985, %v604_v28   ;;  %817 = vmatpush.msrb.mxu1 %v568_v29  ;;  %v550_v28 = vld [vmem:[%s2404_s20 + $0x120] sm:$0xff]  ;;  %v579_v29 = vld [vmem:[%s2404_s20 + $0x208] sm:$0xff] }
  0xac   : > { %948 = vmatpush.msrb.mxu3 %v535_v30  ;;  %634 = vperm.xlu2 %1987, %v600_v31   ;;  %v548_v30 = vld [vmem:[%s2404_s20 + $0x110] sm:$0xff]  ;;  %v2687_v31 = vld [vmem:[%s3632_s1 + $0x138] sm:$0xff] }
  0xad   : > { %659 = vperm.xlu1 %1986, %v605_v32   ;;  %818 = vmatpush.msrb.mxu1 %v566_v33  ;;  %v481_v32 = vld [vmem:[%s3632_s1 + $0x78] sm:$0xff]  ;;  %v546_v33 = vld [vmem:[%s2404_s20 + $0x100] sm:$0xff] }
  0xae   : > { %949 = vmatpush.msrb.mxu3 %v533_v34  ;;  %1016 = vmatpush.msrb.mxu2 %v561_v35  ;;  %v489_v34 = vld [vmem:[%s3632_s1 + $0xb8] sm:$0xff]  ;;  %v606_v35 = vld [vmem:[%s3633_s2 + $0x50] sm:$0xff] }
  0xaf   : > { %819 = vmatpush.msrb.mxu1 %v564_v36  ;;  %1083 = vmatpush.msrb.mxu0 %v589_v37  ;;  %v2705_v36 = vld [vmem:[%s3632_s1 + $0x150] sm:$0xff] }
  0xb0   : > { %794 = vmatmul.f32.gmra.mxu1 %v2571_v38  ;;  %950 = vmatpush.msrb.mxu3 %v531_v39  ;;  %v484_v37 = vld [vmem:[%s3632_s1 + $0x90] sm:$0xff] }
  0xb1   : > { %770 = vmatmul.f32.gmra.mxu0 %v2577_v40  ;;  %1017 = vmatpush.msrb.mxu2 %v559_v41  ;;  %v492_v39 = vld [vmem:[%s3632_s1 + $0xd0] sm:$0xff]  ;;  %v487_v41 = vld [vmem:[%s3632_s1 + $0xa8] sm:$0xff] }
  0xb2   : > { %1868 = vmatmul.msk.f32.gmra.mxu2 %vm692_vm1, %v2583_v42  ;;  %1877 = vmatmul.msk.f32.gmra.mxu3 %vm692_vm1, %v2588_v43 }
  0xb3   : > { %951 = vmatpush.msrb.mxu3 %v529_v44  ;;  %820 = vmatpush.msrb.mxu1 %v562_v45  ;;  %v467_v44 = vld [vmem:[%s3632_s1 + $0x8] sm:$0xff]  ;;  %v473_v45 = vld [vmem:[%s3632_s1 + $0x38] sm:$0xff] }
  0xb4   : > { %639 = vperm.xlu2 %1987, %v601_v46   ;;  %1018 = vmatpush.msrb.mxu2 %v557_v49 }
  0xb5   : > { %952 = vmatpush.msrb.mxu3 %v527_v50  ;;  %1084 = vmatpush.msrb.mxu0 %v587_v51 }
  0xb6   : > { %821 = vmatpush.msrb.mxu1 %v560_v52  ;;  %669 = vperm.xlu0 %1985, %v607_v53   ;;  %v494_v52 = vld [vmem:[%s3632_s1 + $0xe0] sm:$0xff] }
  0xb7   : > { %953 = vmatpush.msrb.mxu3 %v525_v54  ;;  %1019 = vmatpush.msrb.mxu2 %v555_v55 }
  0xb8   : > { %797 = vmatmul.f32.gmra.mxu1 %v2613_v56  ;;  %1085 = vmatpush.msrb.mxu0 %v585_v57  ;;  %v497_v57 = vld [vmem:[%s3632_s1 + $0xf8] sm:$0xff] }
  0xb9   : > { %773 = vmatmul.f32.gmra.mxu0 %v2619_v58  ;;  %954 = vmatpush.msrb.mxu3 %v523_v60 }
  0xba   : > { %1869 = vmatmul.msk.f32.gmra.mxu2 %vm692_vm1, %v2625_v62  ;;  %1878 = vmatmul.msk.f32.gmra.mxu3 %vm692_vm1, %v2630_v63 }
  0xbb   : > { %955 = vmatpush.msrb.mxu3 %v521_v0  ;;  %822 = vmatpush.msrb.mxu1 %v558_v1  ;;  %v500_v0 = vld [vmem:[%s3632_s1 + $0x110] sm:$0xff] }
  0xbc   : > { %674 = vperm.xlu2 %1987, %v608_v2   ;;  %1020 = vmatpush.msrb.mxu2 %v553_v3 }
  0xbd   : > { %956 = vmatpush.msrb.mxu3 %v519_v4  ;;  %823 = vmatpush.msrb.mxu1 %v556_v5  ;;  %v503_v4 = vld [vmem:[%s3632_s1 + $0x128] sm:$0xff] }
  0xbe   : > { %1021 = vmatpush.msrb.mxu2 %v551_v6  ;;  %1086 = vmatpush.msrb.mxu0 %v583_v8 }
  0xbf   : > { %957 = vmatpush.msrb.mxu3 %v517_v12  ;;  %824 = vmatpush.msrb.mxu1 %v554_v13  ;;  %v506_v12 = vld [vmem:[%s3632_s1 + $0x140] sm:$0xff] }
  0xc0   : > { %800 = vmatmul.f32.gmra.mxu1 %v2653_v14  ;;  %1022 = vmatpush.msrb.mxu2 %v549_v15 }
  0xc1   : > { %776 = vmatmul.f32.gmra.mxu0 %v478_v16  ;;  %958 = vmatpush.msrb.mxu3 %v515_v17  ;;  %v509_v17 = vld [vmem:[%s3632_s1 + $0x158] sm:$0xff] }
  0xc2   : > { %1870 = vmatmul.msk.f32.gmra.mxu2 %vm692_vm1, %v2663_v18  ;;  %1879 = vmatmul.msk.f32.gmra.mxu3 %vm692_vm1, %v2668_v19 }
  0xc3   : > { %825 = vmatpush.msrb.mxu1 %v552_v20  ;;  %1087 = vmatpush.msrb.mxu0 %v581_v21 }
  0xc4   : > { %689 = vperm.xlu2 %1987, %v611_v23   ;;  %1023 = vmatpush.msrb.mxu2 %v547_v25 }
  0xc5   : > { %826 = vmatpush.msrb.mxu1 %v550_v28  ;;  %1088 = vmatpush.msrb.mxu0 %v579_v29  ;;  %v512_v29 = vld [vmem:[%s3632_s1 + $0x170] sm:$0xff] }
  0xc7   : > { %827 = vmatpush.msrb.mxu1 %v548_v30 }
  0xc8   : > { %803 = vmatmul.f32.gmra.mxu1 %v2687_v31 }
  0xc9   : > { %779 = vmatmul.f32.gmra.mxu0 %v481_v32  ;;  %828 = vmatpush.msrb.mxu1 %v546_v33 }
  0xca   : > { %1871 = vmatmul.msk.f32.gmra.mxu2 %vm692_vm1, %v489_v34  ;;  %959 = vmatmul.f32.vlgmr.msrb.gmra.mxu3 %v2491_v9  ;;  %v2719_v9 = vld [vmem:[%s3632_s1 + $0x168] sm:$0xff] }
  0xcc   : > { %664 = vperm.xlu2 %1987, %v606_v35  }
  0xd0   : > { %806 = vmatmul.f32.gmra.mxu1 %v2705_v36 }
  0xd1   : > { %782 = vmatmul.f32.gmra.mxu0 %v484_v37 }
  0xd2   : > { %1872 = vmatmul.msk.f32.gmra.mxu2 %vm692_vm1, %v492_v39  ;;  %962 = vmatmul.f32.gmra.mxu3 %v2533_v24  ;;  %v470_v24 = vld [vmem:[%s3632_s1 + $0x20] sm:$0xff] }
  0xd8   : > { %809 = vmatmul.f32.gmra.mxu1 %v2719_v9 }
  0xd9   : > { %785 = vmatmul.f32.gmra.mxu0 %v487_v41 }
  0xda   : > { %965 = vmatmul.f32.gmra.mxu3 %v2577_v40  ;;  %1024 = vmatmul.f32.vlgmr.msrb.gmra.mxu2 %v467_v44  ;;  %v476_v40 = vld [vmem:[%s3632_s1 + $0x50] sm:$0xff] }
  0xe0   : > { %829 = vmatmul.f32.vlgmr.msrb.gmra.mxu1 %v467_v44 }
  0xe1   : > { %1881 = vmatmul.msk.f32.vlgmr.msrb.gmra.mxu0 %vm692_vm1, %v2429_v47  ;;  %v479_v47 = vld [vmem:[%s3632_s1 + $0x68] sm:$0xff] }
  0xe2   : > { %968 = vmatmul.f32.gmra.mxu3 %v2619_v58  ;;  %1027 = vmatmul.f32.gmra.mxu2 %v470_v24 }
  0xe8   : > { %832 = vmatmul.f32.gmra.mxu1 %v470_v24 }
  0xe9   : > { %1882 = vmatmul.msk.f32.gmra.mxu0 %vm692_vm1, %v2457_v59  ;;  %v482_v59 = vld [vmem:[%s3632_s1 + $0x80] sm:$0xff] }
  0xea   : > { %971 = vmatmul.f32.gmra.mxu3 %v478_v16  ;;  %1030 = vmatmul.f32.gmra.mxu2 %v473_v45 }
  0xf0   : > { %835 = vmatmul.f32.gmra.mxu1 %v473_v45 }
  0xf1   : > { %1883 = vmatmul.msk.f32.gmra.mxu0 %vm692_vm1, %v2496_v10  ;;  %v485_v10 = vld [vmem:[%s3632_s1 + $0x98] sm:$0xff] }
  0xf2   : > { %974 = vmatmul.f32.gmra.mxu3 %v481_v32  ;;  %1033 = vmatmul.f32.gmra.mxu2 %v476_v40 }
  0xf8   : > { %838 = vmatmul.f32.gmra.mxu1 %v476_v40 }
  0xf9   : > { %1884 = vmatmul.msk.f32.gmra.mxu0 %vm692_vm1, %v2539_v26  ;;  %v488_v26 = vld [vmem:[%s3632_s1 + $0xb0] sm:$0xff] }
  0xfa   : > { %977 = vmatmul.f32.gmra.mxu3 %v484_v37  ;;  %1036 = vmatmul.f32.gmra.mxu2 %v479_v47 }
 0x100   : > { %841 = vmatmul.f32.gmra.mxu1 %v479_v47 }
 0x101   : > { %1885 = vmatmul.msk.f32.gmra.mxu0 %vm692_vm1, %v2583_v42 }
 0x102   : > { %980 = vmatmul.f32.gmra.mxu3 %v487_v41  ;;  %1039 = vmatmul.f32.gmra.mxu2 %v482_v59 }
 0x108   : > { %844 = vmatmul.f32.gmra.mxu1 %v482_v59 }
 0x109   : > { %1886 = vmatmul.msk.f32.gmra.mxu0 %vm692_vm1, %v2625_v62 }
 0x10a   : > { %983 = vmatmul.f32.gmra.mxu3 %v2485_v7  ;;  %1042 = vmatmul.f32.gmra.mxu2 %v485_v10  ;;  %v491_v7 = vld [vmem:[%s3632_s1 + $0xc8] sm:$0xff] }
 0x110   : > { %847 = vmatmul.f32.gmra.mxu1 %v485_v10 }
 0x111   : > { %1887 = vmatmul.msk.f32.gmra.mxu0 %vm692_vm1, %v2663_v18  ;;  %v2858_v18 = vpop.permute.xlu2 %634 }
 0x112   : > { %986 = vmatmul.f32.gmra.mxu3 %v2527_v22  ;;  %1045 = vmatmul.f32.gmra.mxu2 %v488_v26 }
 0x113   : > { %v2767_v42 = vpop.f32.mrf.mxu2 }
 0x114   : > { %v2769_v46 = vpop.f32.mrf.mxu3 }
 0x118   : > { %850 = vmatmul.f32.gmra.mxu1 %v488_v26 }
 0x119   : > { %1888 = vmatmul.msk.f32.gmra.mxu0 %vm692_vm1, %v489_v34  ;;  %v2873_v30 = vpop.permute.xlu2 %639 }
 0x11a   : > { %989 = vmatmul.f32.gmra.mxu3 %v2571_v38  ;;  %1048 = vmatmul.f32.gmra.mxu2 %v491_v7 }
 0x11b   : > { %v2776_v49 = vpop.f32.mrf.mxu2 }
 0x11c   : > { %v2778_v50 = vpop.f32.mrf.mxu3 }
 0x11d   : > { %v2780_v22 = vpop.f32.mrf.mxu1 }
 0x11e   : > { %v2782_v51 = vpop.f32.mrf.mxu0 }
 0x120   : > { %853 = vmatmul.f32.gmra.mxu1 %v491_v7 }
 0x121   : > { %1889 = vmatmul.msk.f32.gmra.mxu0 %vm692_vm1, %v492_v39  ;;  %v2888_v40 = vpop.permute.xlu2 %674 }
 0x122   : > { %992 = vmatmul.f32.gmra.mxu3 %v2613_v56  ;;  %1051 = vmatmul.f32.gmra.mxu2 %v494_v52 }
 0x125   : > { %v2789_v38 = vpop.f32.mrf.mxu1  ;;  %v2791_v53 = vpop.f32.mrf.mxu2 }
 0x126   : > { %v2793_v54 = vpop.f32.mrf.mxu3  ;;  %v2795_v55 = vpop.f32.mrf.mxu0 }
 0x128   : > { %856 = vmatmul.f32.gmra.mxu1 %v494_v52 }
 0x129   : > { %1890 = vmatmul.msk.f32.gmra.mxu0 %vm692_vm1, %v2434_v48 }
 0x12a   : > { %995 = vmatmul.f32.gmra.mxu3 %v2653_v14  ;;  %1054 = vmatmul.f32.gmra.mxu2 %v497_v57 }
 0x12d   : > { %v2803_v56 = vpop.f32.mrf.mxu1  ;;  %v2805_v58 = vpop.f32.mrf.mxu2 }
 0x12e   : > { %v2807_v60 = vpop.f32.mrf.mxu3  ;;  %v2809_v62 = vpop.f32.mrf.mxu0 }
 0x130   : > { %859 = vmatmul.f32.gmra.mxu1 %v497_v57 }
 0x131   : > { %1891 = vmatmul.msk.f32.gmra.mxu0 %vm692_vm1, %v2463_v61 }
 0x132   : > { %998 = vmatmul.f32.gmra.mxu3 %v2687_v31  ;;  %1057 = vmatmul.f32.gmra.mxu2 %v500_v0 }
 0x135   : > { %v2817_v48 = vpop.f32.mrf.mxu1  ;;  %v2819_v1 = vpop.f32.mrf.mxu2 }
 0x136   : > { %v2821_v2 = vpop.f32.mrf.mxu3  ;;  %v2823_v3 = vpop.f32.mrf.mxu0 }
 0x137   : > { %3641 = vst [vmem:[#allocation6_spill] sm:$0xff] %v2821_v2 }
 0x138   : > { %862 = vmatmul.f32.gmra.mxu1 %v500_v0 }
 0x139   : > { %1892 = vmatmul.msk.f32.gmra.mxu0 %vm692_vm1, %v2501_v11  ;;  %v615_v11 = vpop.permute.xlu0 %614 }
 0x13a   : > { %1001 = vmatmul.f32.gmra.mxu3 %v2705_v36  ;;  %1060 = vmatmul.f32.gmra.mxu2 %v503_v4 }
 0x13d   : > { %v2831_v61 = vpop.f32.mrf.mxu1  ;;  %v2833_v5 = vpop.f32.mrf.mxu2 }
 0x13e   : > { %v2835_v6 = vpop.f32.mrf.mxu3  ;;  %v2837_v8 = vpop.f32.mrf.mxu0 }
 0x13f   : > { %3642 = vst [vmem:[#allocation7_spill] sm:$0xff] %v2835_v6 }
 0x140   : > { %865 = vmatmul.f32.gmra.mxu1 %v503_v4 }
 0x141   : > { %1893 = vmatmul.msk.f32.gmra.mxu0 %vm692_vm1, %v2544_v27  ;;  %v625_v27 = vpop.permute.xlu1 %624  ;;  %v620_v20 = vpop.permute.xlu0 %619 }
 0x142   : > { %1004 = vmatmul.f32.gmra.mxu3 %v2719_v9  ;;  %1063 = vmatmul.f32.gmra.mxu2 %v506_v12 }
 0x145   : > { %v2845_v13 = vpop.f32.mrf.mxu1  ;;  %v2847_v14 = vpop.f32.mrf.mxu2 }
 0x146   : > { %v2849_v15 = vpop.f32.mrf.mxu3  ;;  %v2851_v16 = vpop.f32.mrf.mxu0 }
 0x147   : > { %3643 = vst [vmem:[#allocation8_spill] sm:$0xff] %v2849_v15 }
 0x148   : > { %868 = vmatmul.f32.gmra.mxu1 %v506_v12 }
 0x149   : > { %1894 = vmatmul.msk.f32.gmra.mxu0 %vm692_vm1, %v2588_v43  ;;  %v2871_v43 = vpop.permute.xlu1 %629  ;;  %v2881_v35 = vpop.permute.xlu0 %644 }
 0x14a   : > { %1066 = vmatmul.f32.gmra.mxu2 %v509_v17 }
 0x14d   : > { %v2860_v21 = vpop.f32.mrf.mxu1  ;;  %v2862_v23 = vpop.f32.mrf.mxu2 }
 0x14e   : > { %3644 = vst [vmem:[#allocation9_spill] sm:$0xff] %v2860_v21  ;;  %v960_v25 = vpop.f32.mrf.mxu3  ;;  %v2864_v28 = vpop.f32.mrf.mxu0 }
 0x14f   : > { %v961_v36 = vadd.f32 %v960_v25, %v615_v11 }
 0x150   : > { %871 = vmatmul.f32.gmra.mxu1 %v509_v17 }
 0x151   : > { %1895 = vmatmul.msk.f32.gmra.mxu0 %vm692_vm1, %v2630_v63  ;;  %v766_v63 = vadd.f32 %v2782_v51, %v615_v11  ;;  %v2886_v45 = vpop.permute.xlu1 %649  ;;  %v2891_v10 = vpop.permute.xlu0 %679  ;;  %v769_v51 = vadd.f32 %v2795_v55, %v620_v20 }
 0x152   : > { %1069 = vmatmul.f32.gmra.mxu2 %v512_v29 }
 0x155   : > { %v2875_v31 = vpop.f32.mrf.mxu1  ;;  %v2877_v32 = vpop.f32.mrf.mxu2 }
 0x156   : > { %3645 = vst [vmem:[#allocation10_spill] sm:$0xff] %v2875_v31  ;;  %v963_v33 = vpop.f32.mrf.mxu3  ;;  %v2879_v34 = vpop.f32.mrf.mxu0 }
 0x157   : > { %v964_v26 = vadd.f32 %v963_v33, %v620_v20 }
 0x158   : > { %874 = vmatmul.f32.gmra.mxu1 %v512_v29 }
 0x159   : > { %1896 = vmatmul.msk.f32.gmra.mxu0 %vm692_vm1, %v2668_v19 }
 0x15d   : > { %v830_v37 = vpop.f32.mrf.mxu1  ;;  %v1025_v39 = vpop.f32.mrf.mxu2 }
 0x15e   : > { %v831_v9 = vadd.f32 %v830_v37, %v766_v63  ;;  %v966_v41 = vpop.f32.mrf.mxu3  ;;  %v1026_v44 = vadd.f32 %v1025_v39, %v961_v36  ;;  %v1090_v24 = vpop.f32.mrf.mxu0 }
 0x15f   : > { %v2897_v36 = vpop.permute.xlu2 %689  ;;  %v967_v33 = vadd.f32 %v966_v41, %v625_v27  ;;  %v2901_v39 = vpop.permute.xlu0 %654 }
 0x160   : > { %v896_v47 = vadd.f32 %v2767_v42, %v831_v9  ;;  %v1091_v59 = vadd.f32 %v1090_v24, %v1026_v44  ;;  %v2895_v42 = vpop.permute.xlu1 %684  ;;  %3647 = vst [vmem:[#allocation12_spill] sm:$0xff] %v2897_v36  ;;  %v772_v9 = vadd.f32 %v2809_v62, %v625_v27 }
 0x161   : > { %3646 = vst [vmem:[#allocation11_spill] sm:$0xff] %v2895_v42 }
 0x162   : > { %v1897_v19 = vmul.f32 -1.442695, %v896_v47  ;;  %v1898_v7 = vmul.f32 -1.442695, %v1091_v59 }
 0x164   : > { %1988 = vpow2.f32 %v1897_v19 }
 0x165   : > { %1990 = vpow2.f32 %v1898_v7  ;;  %v833_v52 = vpop.f32.mrf.mxu1  ;;  %v1028_v57 = vpop.f32.mrf.mxu2 }
 0x166   : > { %v834_v0 = vadd.f32 %v833_v52, %v769_v51  ;;  %v969_v4 = vpop.f32.mrf.mxu3  ;;  %v1029_v12 = vadd.f32 %v1028_v57, %v964_v26  ;;  %v1093_v11 = vpop.f32.mrf.mxu0 }
 0x168   : > { %v899_v17 = vadd.f32 %v2776_v49, %v834_v0  ;;  %v1094_v25 = vadd.f32 %v1093_v11, %v1029_v12  ;;  %v2911_v57 = vpop.permute.xlu1 %659  ;;  %v970_v12 = vadd.f32 %v969_v4, %v2871_v43 }
 0x16a   : > { %v1989_v29 = vpop.eup %1988  ;;  %v1899_v63 = vmul.f32 -1.442695, %v899_v17  ;;  %v1900_v20 = vmul.f32 -1.442695, %v1094_v25  ;;  %v2918_v17 = vpop.permute.xlu2 %664 }
 0x16b   : > { %v1991_v37 = vpop.eup %1990  ;;  %v2899_v55 = vadd.f32 1.0, %v1989_v29  ;;  %v2920_v25 = vpop.permute.xlu0 %669 }
 0x16c   : > { %v2904_v44 = vadd.f32 1.0, %v1991_v37  ;;  %1992 = vpow2.f32 %v1899_v63 }
 0x16d   : > { %1994 = vrcp.f32 %v2899_v55  ;;  %v836_v49 = vpop.f32.mrf.mxu1  ;;  %v1031_v24 = vpop.f32.mrf.mxu2  ;;  %vm1175_vm2 = vweird.f32 %v2899_v55 }
 0x16e   : > { %1996 = vrcp.f32 %v2904_v44  ;;  %v837_v47 = vadd.f32 %v836_v49, %v772_v9  ;;  %v972_v41 = vpop.f32.mrf.mxu3  ;;  %v1032_v59 = vadd.f32 %v1031_v24, %v967_v33  ;;  %v1096_v26 = vpop.f32.mrf.mxu0  ;;  %v2931_v24 = vadd.f32 %v2780_v22, %v2901_v39 }
 0x16f   : > { %1998 = vpow2.f32 %v1900_v20  ;;  %vm1190_vm3 = vweird.f32 %v2904_v44 }
 0x170   : > { %v902_v19 = vadd.f32 %v2791_v53, %v837_v47  ;;  %v1097_v7 = vadd.f32 %v1096_v26, %v1032_v59  ;;  %v775_v53 = vadd.f32 %v2823_v3, %v2871_v43  ;;  %v2935_v3 = vadd.f32 %v2789_v38, %v2911_v57 }
 0x171   : > { %v2939_v43 = vadd.f32 %v2803_v56, %v2918_v17  ;;  %v2943_v59 = vadd.f32 %v2817_v48, %v2920_v25  ;;  %v2951_v38 = vadd.f32 %v2831_v61, %v2888_v40  ;;  %v778_v56 = vadd.f32 %v2837_v8, %v2858_v18 }
 0x172   : > { %v1993_v51 = vpop.eup %1992  ;;  %v1901_v52 = vmul.f32 -1.442695, %v902_v19  ;;  %v1902_v62 = vmul.f32 -1.442695, %v1097_v7  ;;  %v2957_v48 = vadd.f32 %v2851_v16, %v2873_v30  ;;  %v2968_v61 = vadd.f32 %v2879_v34, %v2886_v45 }
 0x173   : > { %v2909_v27 = vpop.eup %1994  ;;  %v2913_v0 = vadd.f32 1.0, %v1993_v51 }
 0x174   : > { %v2916_v11 = vpop.eup %1996  ;;  %2000 = vpow2.f32 %v1901_v52  ;;  %v1171_v33 = vmul.f32 %v2909_v27, %v2899_v55  ;;  %v2961_v52 = vadd.f32 %v2864_v28, %v2881_v35  ;;  %v1181_v28 = vand.u32 2147483648, %v2899_v55 }
 0x175   : > { %v1999_v29 = vpop.eup %1998  ;;  %2002 = vrcp.f32 %v2913_v0  ;;  %v839_v63 = vpop.f32.mrf.mxu1  ;;  %v1186_v26 = vmul.f32 %v2916_v11, %v2904_v44  ;;  %vm1176_vm5 = vweird.f32 %v2909_v27  ;;  %vm1191_vm6 = vweird.f32 %v2916_v11 }
 0x176   : > { %v1034_v37 = vpop.f32.mrf.mxu2  ;;  %v2927_v20 = vadd.f32 1.0, %v1999_v29  ;;  %2004 = vpow2.f32 %v1902_v62  ;;  %v840_v4 = vadd.f32 %v839_v63, %v775_v53  ;;  %v975_v9 = vpop.f32.mrf.mxu3  ;;  %v1172_v19 = vsub.f32 1.0, %v1171_v33  ;;  %vm3011_vm9 = vmor %vm1175_vm2, %vm1176_vm5 }
 0x177   : > { %v1099_v49 = vpop.f32.mrf.mxu0  ;;  %v1035_v47 = vadd.f32 %v1034_v37, %v970_v12  ;;  %v1179_v29 = vand.u32 2147483647, %v2899_v55  ;;  %v1187_v33 = vsub.f32 1.0, %v1186_v26  ;;  %v1182_v6 = vor.u32 1.1754944e-38, %v1181_v28  ;;  %vm3039_vm11 = vmor %vm1190_vm3, %vm1191_vm6 }
 0x178   : > { %2006 = vrcp.f32 %v2927_v20  ;;  %v905_v22 = vadd.f32 %v2805_v58, %v840_v4  ;;  %v973_v58 = vadd.f32 %v972_v41, %v2858_v18  ;;  %v1173_v37 = vmul.f32 %v2909_v27, %v1172_v19 }
 0x179   : > { %v1100_v7 = vadd.f32 %v1099_v49, %v1035_v47  ;;  %vm2986_vm4 = vcmp.eq.f32.partialorder %v1179_v29, 8.507059e+37  ;;  %v1196_v19 = vand.u32 2147483648, %v2904_v44  ;;  %v1211_v29 = vand.u32 2147483648, %v2913_v0 }
 0x17a   : > { %v2001_v51 = vpop.eup %2000  ;;  %v1903_v62 = vmul.f32 -1.442695, %v905_v22  ;;  %vm1205_vm8 = vweird.f32 %v2913_v0  ;;  %vm1220_vm10 = vweird.f32 %v2927_v20  ;;  %v1224_v55 = vand.u32 2147483647, %v2927_v20 }
 0x17b   : > { %v2964_v12 = vpop.eup %2002  ;;  %v2970_v8 = vadd.f32 1.0, %v2001_v51  ;;  %v1904_v53 = vmul.f32 -1.442695, %v1100_v7 }
 0x17c   : > { %v2005_v16 = vpop.eup %2004  ;;  %2008 = vpow2.f32 %v1903_v62  ;;  %v1201_v18 = vmul.f32 %v2964_v12, %v2913_v0  ;;  %v1194_v62 = vand.u32 2147483647, %v2904_v44  ;;  %vm1206_vm12 = vweird.f32 %v2964_v12 }
 0x17d   : > { %2010 = vrcp.f32 %v2970_v8  ;;  %v2978_v41 = vadd.f32 1.0, %v2005_v16  ;;  %v842_v34 = vpop.f32.mrf.mxu1  ;;  %vm3075_vm15 = vmor %vm1205_vm8, %vm1206_vm12  ;;  %vm3079_vm0 = vcmp.eq.f32.partialorder %v1224_v55, 8.507059e+37  ;;  %vm1235_vm2 = vweird.f32 %v2970_v8 }
 0x17e   : > { %v1037_v63 = vpop.f32.mrf.mxu2  ;;  %v2981_v4 = vpop.eup %2006  ;;  %2012 = vpow2.f32 %v1904_v53  ;;  %v843_v49 = vadd.f32 %v842_v34, %v778_v56  ;;  %v1188_v56 = vmul.f32 %v2916_v11, %v1187_v33  ;;  %v1174_v34 = vadd.f32 %v2909_v27, %v1173_v37 }
 0x17f   : > { %v978_v47 = vpop.f32.mrf.mxu3  ;;  %v1038_v26 = vadd.f32 %v1037_v63, %v973_v58  ;;  %v1102_v22 = vpop.f32.mrf.mxu0  ;;  %v1216_v7 = vmul.f32 %v2981_v4, %v2927_v20  ;;  %v1202_v58 = vsub.f32 1.0, %v1201_v18  ;;  %2014 = vrcp.f32 %v2978_v41 }
 0x180   : > { %v908_v16 = vadd.f32 %v2819_v1, %v843_v49  ;;  %v976_v1 = vadd.f32 %v975_v9, %v2873_v30  ;;  %vm3002_vm7 = vcmp.eq.f32.partialorder %v1194_v62, 8.507059e+37  ;;  %v1197_v18 = vor.u32 1.1754944e-38, %v1196_v19 }
 0x181   : > { %v1103_v53 = vadd.f32 %v1102_v22, %v1038_v26  ;;  %v1217_v15 = vsub.f32 1.0, %v1216_v7  ;;  %v1189_v30 = vadd.f32 %v2916_v11, %v1188_v56  ;;  %v1209_v9 = vand.u32 2147483647, %v2913_v0 }
 0x182   : > { %v2009_v63 = vpop.eup %2008  ;;  %v1905_v31 = vmul.f32 -1.442695, %v908_v16  ;;  %v1203_v22 = vmul.f32 %v2964_v12, %v1202_v58  ;;  %v3022_v7 = vor.u32 1.1754944e-38, %v1211_v29  ;;  %vm1221_vm14 = vweird.f32 %v2981_v4 }
 0x183   : > { %v1906_v36 = vmul.f32 -1.442695, %v1103_v53  ;;  %v2998_v21 = vpop.eup %2010  ;;  %v3025_v62 = vadd.f32 1.0, %v2009_v63  ;;  %v1218_v56 = vmul.f32 %v2981_v4, %v1217_v15  ;;  %v1193_v63 = vsel %vm3039_vm11, %v2916_v11, %v1189_v30  ;;  %vm3094_vm1 = vmor %vm1220_vm10, %vm1221_vm14 }
 0x184   : > { %v2013_v37 = vpop.eup %2012  ;;  %2016 = vpow2.f32 %v1905_v31  ;;  %v1178_v31 = vsel %vm3011_vm9, %v2909_v27, %v1174_v34  ;;  %v1231_v27 = vmul.f32 %v2998_v21, %v2970_v8  ;;  %vm3053_vm13 = vcmp.eq.f32.partialorder %v1209_v9, 8.507059e+37 }
 0x185   : > { %v845_v49 = vpop.f32.mrf.mxu1  ;;  %2018 = vpow2.f32 %v1906_v36  ;;  %v3029_v42 = vpop.eup %2014  ;;  %v3033_v34 = vadd.f32 1.0, %v2013_v37  ;;  %v3047_v29 = vsel %vm2986_vm4, %v1182_v6, %v1178_v31  ;;  %v1204_v28 = vadd.f32 %v2964_v12, %v1203_v22 }
 0x186   : > { %v1040_v26 = vpop.f32.mrf.mxu2  ;;  %v846_v19 = vadd.f32 %v845_v49, %v2957_v48  ;;  %v1226_v48 = vand.u32 2147483648, %v2927_v20  ;;  %v1246_v6 = vmul.f32 %v3029_v42, %v2978_v41  ;;  %2020 = vrcp.f32 %v3025_v62 }
 0x187   : > { %v981_v16 = vpop.f32.mrf.mxu3  ;;  %v1105_v53 = vpop.f32.mrf.mxu0  ;;  %v1041_v58 = vadd.f32 %v1040_v26, %v976_v1  ;;  %v979_v1 = vadd.f32 %v978_v47, %v2881_v35  ;;  %v1219_v51 = vadd.f32 %v2981_v4, %v1218_v56  ;;  %v1232_v30 = vsub.f32 1.0, %v1231_v27 }
 0x188   : > { %v911_v15 = vadd.f32 %v2833_v5, %v846_v19  ;;  %2022 = vrcp.f32 %v3033_v34  ;;  %v3069_v49 = vsel %vm3002_vm7, %v1197_v18, %v1193_v63  ;;  %v1239_v22 = vand.u32 2147483647, %v2970_v8 }
 0x189   : > { %v1106_v37 = vadd.f32 %v1105_v53, %v1041_v58  ;;  %v1208_v0 = vsel %vm3075_vm15, %v2964_v12, %v1204_v28  ;;  %v1241_v53 = vand.u32 2147483648, %v2970_v8  ;;  %v1247_v56 = vsub.f32 1.0, %v1246_v6 }
 0x18a   : > { %v2017_v5 = vpop.eup %2016  ;;  %v1907_v11 = vmul.f32 -1.442695, %v911_v15  ;;  %v1223_v12 = vsel %vm3094_vm1, %v2981_v4, %v1219_v51  ;;  %v1227_v15 = vor.u32 1.1754944e-38, %v1226_v48  ;;  %v1233_v20 = vmul.f32 %v2998_v21, %v1232_v30 }
 0x18b   : > { %v3065_v9 = vadd.f32 1.0, %v2017_v5  ;;  %v1908_v35 = vmul.f32 -1.442695, %v1106_v37  ;;  %v2019_v47 = vpop.eup %2018  ;;  %vm1236_vm3 = vweird.f32 %v2998_v21  ;;  %vm1250_vm4 = vweird.f32 %v2978_v41 }
 0x18c   : > { %2024 = vpow2.f32 %v1907_v11  ;;  %v3085_v19 = vadd.f32 1.0, %v2019_v47  ;;  %v3106_v63 = vpop.eup %2020  ;;  %v982_v4 = vadd.f32 %v981_v16, %v2886_v45  ;;  %v3117_v48 = vsel %vm3053_vm13, %v3022_v7, %v1208_v0  ;;  %vm3155_vm7 = vmor %vm1235_vm2, %vm1236_vm3 }
 0x18d   : > { %2026 = vrcp.f32 %v3065_v9  ;;  %v848_v33 = vpop.f32.mrf.mxu1  ;;  %v3121_v5 = vsel %vm3079_vm0, %v1227_v15, %v1223_v12  ;;  %vm3123_vm5 = vcmp.eq.f32.partialorder %v1239_v22, 8.507059e+37  ;;  %v1242_v51 = vor.u32 1.1754944e-38, %v1241_v53 }
 0x18e   : > { %v1043_v18 = vpop.f32.mrf.mxu2  ;;  %2028 = vpow2.f32 %v1908_v35  ;;  %v849_v27 = vadd.f32 %v848_v33, %v2961_v52  ;;  %v3111_v52 = vpop.eup %2022  ;;  %v1248_v30 = vmul.f32 %v3029_v42, %v1247_v56  ;;  %v3132_v7 = vmul.f32 %v3106_v63, %v3025_v62 }
 0x18f   : > { %v984_v58 = vpop.f32.mrf.mxu3  ;;  %v1108_v36 = vpop.f32.mrf.mxu0  ;;  %2030 = vrcp.f32 %v3085_v19  ;;  %v1044_v28 = vadd.f32 %v1043_v18, %v979_v1  ;;  %v1333_v16 = vand.u32 2147483648, %v3065_v9  ;;  %v1234_v35 = vadd.f32 %v2998_v21, %v1233_v20 }
 0x190   : > { %v914_v37 = vadd.f32 %v2847_v14, %v849_v27  ;;  %v3140_v26 = vmul.f32 %v3111_v52, %v3033_v34  ;;  %v1348_v18 = vand.u32 2147483648, %v3085_v19  ;;  %vm1251_vm6 = vweird.f32 %v3029_v42 }
 0x191   : > { %v1109_v11 = vadd.f32 %v1108_v36, %v1044_v28  ;;  %v3160_v36 = vadd.f32 %v3029_v42, %v1248_v30  ;;  %v1254_v12 = vand.u32 2147483647, %v2978_v41  ;;  %v1256_v15 = vand.u32 2147483648, %v2978_v41  ;;  %vm3184_vm9 = vmor %vm1250_vm4, %vm1251_vm6 }
 0x192   : > { %v2025_v1 = vpop.eup %2024  ;;  %v1909_v6 = vmul.f32 -1.442695, %v914_v37  ;;  %v1238_v8 = vsel %vm3155_vm7, %v2998_v21, %v1234_v35  ;;  %vm1327_vm8 = vweird.f32 %v3065_v9  ;;  %v1331_v2 = vand.u32 2147483647, %v3065_v9 }
 0x193   : > { %v3128_v45 = vpop.eup %2026  ;;  %v3135_v44 = vadd.f32 1.0, %v2025_v1  ;;  %v1910_v22 = vmul.f32 -1.442695, %v1109_v11  ;;  %v1346_v35 = vand.u32 2147483647, %v3085_v19  ;;  %vm1342_vm10 = vweird.f32 %v3085_v19 }
 0x194   : > { %v2029_v47 = vpop.eup %2028  ;;  %v1323_v31 = vmul.f32 %v3128_v45, %v3065_v9  ;;  %2032 = vpow2.f32 %v1909_v6  ;;  %v3172_v6 = vor.u32 1.1754944e-38, %v1333_v16  ;;  %vm3204_vm11 = vcmp.eq.f32.partialorder %v1254_v12, 8.507059e+37 }
 0x195   : > { %v3144_v33 = vpop.eup %2030  ;;  %2034 = vrcp.f32 %v3135_v44  ;;  %v3148_v0 = vadd.f32 1.0, %v2029_v47  ;;  %v851_v55 = vpop.f32.mrf.mxu1  ;;  %v3176_v47 = vor.u32 1.1754944e-38, %v1348_v18  ;;  %v3192_v18 = vsel %vm3123_vm5, %v1242_v51, %v1238_v8 }
 0x196   : > { %v1046_v53 = vpop.f32.mrf.mxu2  ;;  %2036 = vpow2.f32 %v1910_v22  ;;  %v1324_v20 = vsub.f32 1.0, %v1323_v31  ;;  %v1338_v37 = vmul.f32 %v3144_v33, %v3085_v19  ;;  %v852_v11 = vadd.f32 %v851_v55, %v2968_v61 }
 0x197   : > { %v1111_v56 = vpop.f32.mrf.mxu0  ;;  %2038 = vrcp.f32 %v3148_v0  ;;  %v987_v30 = vpop.f32.mrf.mxu3  ;;  %v985_v31 = vadd.f32 %v984_v58, %v2901_v39  ;;  %v1047_v22 = vadd.f32 %v1046_v53, %v982_v4  ;;  %v1253_v39 = vsel %vm3184_vm9, %v3029_v42, %v3160_v36 }
 0x198   : > { %v917_v61 = vadd.f32 %v2862_v23, %v852_v11  ;;  %v1325_v41 = vmul.f32 %v3128_v45, %v1324_v20  ;;  %v1339_v4 = vsub.f32 1.0, %v1338_v37  ;;  %v1363_v53 = vand.u32 2147483648, %v3135_v44 }
 0x199   : > { %v1112_v27 = vadd.f32 %v1111_v56, %v1047_v22  ;;  %v1378_v20 = vand.u32 2147483648, %v3148_v0  ;;  %vm3217_vm12 = vcmp.eq.f32.partialorder %v1331_v2, 8.507059e+37  ;;  %v1257_v21 = vor.u32 1.1754944e-38, %v1256_v15 }
 0x19a   : > { %v2033_v16 = vpop.eup %2032  ;;  %v1911_v42 = vmul.f32 -1.442695, %v917_v61  ;;  %vm1328_vm13 = vweird.f32 %v3128_v45  ;;  %v1340_v61 = vmul.f32 %v3144_v33, %v1339_v4  ;;  %vm1343_vm14 = vweird.f32 %v3144_v33 }
 0x19b   : > { %v3198_v58 = vpop.eup %2034  ;;  %v3202_v55 = vadd.f32 1.0, %v2033_v16  ;;  %v1326_v2 = vadd.f32 %v3128_v45, %v1325_v41  ;;  %vm3228_vm15 = vcmp.eq.f32.partialorder %v1346_v35, 8.507059e+37  ;;  %vm1357_vm0 = vweird.f32 %v3135_v44  ;;  %vm3248_vm1 = vmor %vm1327_vm8, %vm1328_vm13 }
 0x19c   : > { %v2037_v14 = vpop.eup %2036  ;;  %v1353_v51 = vmul.f32 %v3198_v58, %v3135_v44  ;;  %v3233_v15 = vor.u32 1.1754944e-38, %v1363_v53  ;;  %v1912_v1 = vmul.f32 -1.442695, %v1112_v27  ;;  %v988_v28 = vadd.f32 %v987_v30, %v2911_v57  ;;  %vm3272_vm3 = vmor %vm1342_vm10, %vm1343_vm14 }
 0x19d   : > { %v3211_v36 = vpop.eup %2038  ;;  %2040 = vrcp.f32 %v3202_v55  ;;  %v3215_v37 = vadd.f32 1.0, %v2037_v14  ;;  %v854_v12 = vpop.f32.mrf.mxu1  ;;  %v1361_v35 = vand.u32 2147483647, %v3135_v44  ;;  %vm1372_vm2 = vweird.f32 %v3148_v0 }
 0x19e   : > { %v1049_v11 = vpop.f32.mrf.mxu2  ;;  %v1354_v16 = vsub.f32 1.0, %v1353_v51  ;;  %v1368_v56 = vmul.f32 %v3211_v36, %v3148_v0  ;;  %2042 = vpow2.f32 %v1911_v42  ;;  %v855_v4 = vadd.f32 %v854_v12, %v2931_v24 }
 0x19f   : > { %v1114_v22 = vpop.f32.mrf.mxu0  ;;  %2044 = vrcp.f32 %v3215_v37  ;;  %v3240_v42 = vor.u32 1.1754944e-38, %v1378_v20  ;;  %v1050_v41 = vadd.f32 %v1049_v11, %v985_v31  ;;  %v3255_v20 = vpop.f32.mrf.mxu3  ;;  %v1376_v57 = vand.u32 2147483647, %v3148_v0 }
 0x1a0   : > { %v1369_v51 = vsub.f32 1.0, %v1368_v56  ;;  %v1355_v27 = vmul.f32 %v3198_v58, %v1354_v16  ;;  %2046 = vpow2.f32 %v1912_v1  ;;  %v920_v24 = vadd.f32 %v2877_v32, %v855_v4 }
 0x1a1   : > { %v1330_v9 = vsel %vm3248_vm1, %v3128_v45, %v1326_v2  ;;  %v1115_v31 = vadd.f32 %v1114_v22, %v1050_v41  ;;  %v1341_v12 = vadd.f32 %v3144_v33, %v1340_v61  ;;  %v3266_v11 = vsel %vm3204_vm11, %v1257_v21, %v1253_v39 }
 0x1a2   : > { %v1370_v16 = vmul.f32 %v3211_v36, %v1369_v51  ;;  %v1393_v56 = vand.u32 2147483648, %v3202_v55  ;;  %2048 = vtanh.f32 %v920_v24  ;;  %v1408_v23 = vand.u32 2147483648, %v3215_v37 }
 0x1a3   : > { %v3258_v30 = vpop.eup %2040  ;;  %v1345_v19 = vsel %vm3272_vm3, %v3144_v33, %v1341_v12  ;;  %2050 = vtanh.f32 %v1115_v31  ;;  %vm3288_vm4 = vcmp.eq.f32.partialorder %v1361_v35, 8.507059e+37  ;;  %vm1358_vm5 = vweird.f32 %v3198_v58  ;;  %v1602_v33 = vld [vmem:[%s3299_s18] sm:$0xff] }
 0x1a4   : > { %v2043_v1 = vpop.eup %2042  ;;  %v1383_v45 = vmul.f32 %v3258_v30, %v3202_v55  ;;  %v1335_v4 = vsel %vm3217_vm12, %v3172_v6, %v1330_v9  ;;  %v1356_v41 = vadd.f32 %v3198_v58, %v1355_v27  ;;  %vm1373_vm6 = vweird.f32 %v3211_v36  ;;  %v1603_v9 = vld [vmem:[%s3299_s18 + $0x8] sm:$0xff]  ;;  %vm3321_vm8 = vmor %vm1357_vm0, %vm1358_vm5 }
 0x1a5   : > { %v3280_v39 = vpop.eup %2044  ;;  %v3283_v21 = vadd.f32 1.0, %v2043_v1  ;;  %v857_v22 = vpop.f32.mrf.mxu1  ;;  %vm3305_vm7 = vcmp.eq.f32.partialorder %v1376_v57, 8.507059e+37  ;;  %v3309_v8 = vor.u32 1.1754944e-38, %v1393_v56  ;;  %v1350_v6 = vsel %vm3228_vm15, %v3176_v47, %v1345_v19  ;;  %vm3340_vm11 = vmor %vm1372_vm2, %vm1373_vm6 }
 0x1a6   : > { %v1052_v2 = vpop.f32.mrf.mxu2  ;;  %v1398_v51 = vmul.f32 %v3280_v39, %v3215_v37  ;;  %v1384_v53 = vsub.f32 1.0, %v1383_v45  ;;  %v2047_v31 = vpop.eup %2046  ;;  %v858_v27 = vadd.f32 %v857_v22, %v2935_v3  ;;  %v1371_v12 = vadd.f32 %v3211_v36, %v1370_v16 }
 0x1a7   : > { %v1117_v35 = vpop.f32.mrf.mxu0  ;;  %2052 = vrcp.f32 %v3283_v21  ;;  %vm1387_vm9 = vweird.f32 %v3202_v55  ;;  %v3326_v32 = vor.u32 1.1754944e-38, %v1408_v23  ;;  %v3328_v14 = vadd.f32 1.0, %v2047_v31 }
 0x1a8   : > { %v1399_v1 = vsub.f32 1.0, %v1398_v51  ;;  %v1610_v47 = vmul.f32 %v1602_v33, %v1335_v4  ;;  %v2049_v45 = vpop.eup %2048  ;;  %vm1402_vm10 = vweird.f32 %v3215_v37  ;;  %v1423_v3 = vand.u32 2147483648, %v3283_v21 }
 0x1a9   : > { %v923_v16 = vadd.f32 %v2769_v46, %v858_v27  ;;  %v1360_v44 = vsel %vm3321_vm8, %v3198_v58, %v1356_v41  ;;  %v1053_v56 = vadd.f32 %v1052_v2, %v988_v28  ;;  %v2051_v19 = vpop.eup %2050  ;;  %v1385_v22 = vmul.f32 %v3258_v30, %v1384_v53  ;;  %v993_v28 = vpop.f32.mrf.mxu3 }
 0x1aa   : > { %2054 = vrcp.f32 %v3328_v14  ;;  %v1618_v46 = vmul.f32 %v2049_v45, %v3047_v29  ;;  %v1611_v51 = vmul.f32 %v1603_v9, %v1350_v6  ;;  %v1619_v58 = vmul.f32 %v2051_v19, %v3069_v49  ;;  %v1604_v6 = vld [vmem:[%s3299_s18 + $0x10] sm:$0xff] }
 0x1ab   : > { %2056 = vtanh.f32 %v923_v16  ;;  %v1118_v2 = vadd.f32 %v1117_v35, %v1053_v56  ;;  %v1375_v0 = vsel %vm3340_vm11, %v3211_v36, %v1371_v12  ;;  %v1400_v33 = vmul.f32 %v3280_v39, %v1399_v1 }
 0x1ac   : > { %v3354_v41 = vadd.f32 %v1618_v46, %v1610_v47  ;;  %v991_v29 = vadd.f32 %v3255_v20, %v2918_v17  ;;  %v1391_v49 = vand.u32 2147483647, %v3202_v55  ;;  %v3361_v31 = vadd.f32 %v1619_v58, %v1611_v51  ;;  %v1605_v20 = vld [vmem:[%s3299_s18 + $0x18] sm:$0xff] }
 0x1ad   : > { %v3351_v4 = vpop.eup %2052  ;;  %v860_v53 = vpop.f32.mrf.mxu1  ;;  %v1365_v36 = vsel %vm3288_vm4, %v3233_v15, %v1360_v44  ;;  %2058 = vtanh.f32 %v1118_v2  ;;  %vm1388_vm12 = vweird.f32 %v3258_v30  ;;  %v1380_v17 = vsel %vm3305_vm7, %v3240_v42, %v1375_v0 }
 0x1ae   : > { %v1413_v35 = vmul.f32 %v3351_v4, %v3283_v21  ;;  %v1055_v9 = vpop.f32.mrf.mxu2  ;;  %1650 = vst [vmem:[%s3369_s17] sm:$0xff] %v3354_v41  ;;  %v861_v27 = vadd.f32 %v860_v53, %v2939_v43  ;;  %v1386_v15 = vadd.f32 %v3258_v30, %v1385_v22  ;;  %vm1403_vm13 = vweird.f32 %v3280_v39  ;;  %vm3393_vm15 = vmor %vm1387_vm9, %vm1388_vm12 }
 0x1af   : > { %v1120_v61 = vpop.f32.mrf.mxu0  ;;  %vm1417_vm14 = vweird.f32 %v3283_v21  ;;  %v3381_v57 = vor.u32 1.1754944e-38, %v1423_v3  ;;  %1651 = vst [vmem:[%s3369_s17 + $0x8] sm:$0xff] %v3361_v31  ;;  %v1612_v47 = vmul.f32 %v1604_v6, %v1365_v36  ;;  %v1056_v24 = vadd.f32 %v1055_v9, %v991_v29  ;;  %vm3406_vm1 = vmor %vm1402_vm10, %vm1403_vm13 }
 0x1b0   : > { %v1414_v12 = vsub.f32 1.0, %v1413_v35  ;;  %v3385_v1 = vpop.eup %2054  ;;  %v926_v42 = vadd.f32 %v2778_v50, %v861_v27  ;;  %v1401_v43 = vadd.f32 %v3280_v39, %v1400_v33  ;;  %v994_v44 = vadd.f32 %v993_v28, %v2920_v25  ;;  %v1606_v33 = vld [vmem:[%s3299_s18 + $0x20] sm:$0xff] }
 0x1b1   : > { %v2057_v45 = vpop.eup %2056  ;;  %v1428_v3 = vmul.f32 %v3385_v1, %v3328_v14  ;;  %v1613_v56 = vmul.f32 %v1605_v20, %v1380_v17  ;;  %v1406_v50 = vand.u32 2147483647, %v3215_v37  ;;  %vm1265_vm0 = vweird.f32 %v3025_v62  ;;  %v996_v29 = vpop.f32.mrf.mxu3 }
 0x1b2   : > { %v1620_v19 = vmul.f32 %v2057_v45, %v3117_v48  ;;  %v1390_v23 = vsel %vm3393_vm15, %v3258_v30, %v1386_v15  ;;  %2060 = vtanh.f32 %v926_v42  ;;  %v1121_v25 = vadd.f32 %v1120_v61, %v1056_v24  ;;  %v3703_v42 = vld [vmem:[#allocation11_spill] sm:$0xff] }
 0x1b3   : > { %v2059_v22 = vpop.eup %2058  ;;  %v1415_v46 = vmul.f32 %v3351_v4, %v1414_v12  ;;  %vm1418_vm2 = vweird.f32 %v3351_v4  ;;  %v1405_v37 = vsel %vm3406_vm1, %v3280_v39, %v1401_v43  ;;  %v3692_v51 = vsub.f32 1.0, %v3132_v7 }
 0x1b4   : > { %v3422_v58 = vadd.f32 %v1620_v19, %v1612_v47  ;;  %v1621_v30 = vmul.f32 %v2059_v22, %v3121_v5  ;;  %vm1392_vm3 = vcmp.eq.f32.partialorder %v1391_v49, 8.507059e+37  ;;  %2062 = vtanh.f32 %v1121_v25  ;;  %v1607_v49 = vld [vmem:[%s3299_s18 + $0x28] sm:$0xff]  ;;  %vm3445_vm7 = vmor %vm1417_vm14, %vm1418_vm2 }
 0x1b5   : > { %v1263_v48 = vmul.f32 %v3106_v63, %v3692_v51  ;;  %v863_v28 = vpop.f32.mrf.mxu1  ;;  %v1429_v2 = vsub.f32 1.0, %v1428_v3  ;;  %vm1432_vm4 = vweird.f32 %v3328_v14  ;;  %v1395_v0 = vsel %vm1392_vm3, %v3309_v8, %v1390_v23 }
 0x1b6   : > { %vm1407_vm5 = vcmp.eq.f32.partialorder %v1406_v50, 8.507059e+37  ;;  %v864_v7 = vadd.f32 %v863_v28, %v2943_v59  ;;  %v1438_v39 = vand.u32 2147483648, %v3328_v14  ;;  %1652 = vst [vmem:[%s3369_s17 + $0x10] sm:$0xff] %v3422_v58  ;;  %v3432_v5 = vadd.f32 %v1621_v30, %v1613_v56  ;;  %v1058_v59 = vpop.f32.mrf.mxu2  ;;  %v1608_v50 = vld [vmem:[%s3299_s18 + $0x30] sm:$0xff] }
 0x1b7   : > { %v1410_v53 = vsel %vm1407_vm5, %v3326_v32, %v1405_v37  ;;  %vm1266_vm6 = vweird.f32 %v3106_v63  ;;  %v1264_v8 = vadd.f32 %v3106_v63, %v1263_v48  ;;  %v1416_v36 = vadd.f32 %v3351_v4, %v1415_v46  ;;  %v1123_v15 = vpop.f32.mrf.mxu0 }
 0x1b8   : > { %v929_v35 = vadd.f32 %v2793_v54, %v864_v7  ;;  %v1421_v6 = vand.u32 2147483647, %v3283_v21  ;;  %v2061_v9 = vpop.eup %2060  ;;  %1653 = vst [vmem:[%s3369_s17 + $0x18] sm:$0xff] %v3432_v5  ;;  %v1614_v32 = vmul.f32 %v1606_v33, %v1395_v0  ;;  %v997_v54 = vadd.f32 %v996_v29, %v2888_v40  ;;  %vm3464_vm9 = vmor %vm1265_vm0, %vm1266_vm6  ;;  %v1609_v29 = vld [vmem:[%s3299_s18 + $0x38] sm:$0xff] }
 0x1b9   : > { %v1269_v20 = vand.u32 2147483647, %v3025_v62  ;;  %v1271_v27 = vand.u32 2147483648, %v3025_v62  ;;  %v1430_v61 = vmul.f32 %v3385_v1, %v1429_v2  ;;  %v1622_v12 = vmul.f32 %v2061_v9, %v3192_v18  ;;  %v999_v22 = vpop.f32.mrf.mxu3 }
 0x1ba   : > { %v1420_v21 = vsel %vm3445_vm7, %v3351_v4, %v1416_v36  ;;  %2064 = vtanh.f32 %v929_v35  ;;  %v2063_v47 = vpop.eup %2062  ;;  %vm1433_vm8 = vweird.f32 %v3385_v1  ;;  %v1615_v40 = vmul.f32 %v1607_v49, %v1410_v53 }
 0x1bb   : > { %v1059_v18 = vadd.f32 %v1058_v59, %v994_v44  ;;  %v3697_v24 = vsub.f32 1.0, %v3140_v26  ;;  %v3471_v43 = vadd.f32 %v1622_v12, %v1614_v32  ;;  %v1623_v45 = vmul.f32 %v2063_v47, %v3266_v11  ;;  %vm3490_vm13 = vmor %vm1432_vm4, %vm1433_vm8  ;;  %v3702_v32 = vld [vmem:[#allocation6_spill] sm:$0xff] }
 0x1bc   : > { %v1268_v16 = vsel %vm3464_vm9, %v3106_v63, %v1264_v8  ;;  %vm1422_vm10 = vcmp.eq.f32.partialorder %v1421_v6, 8.507059e+37  ;;  %vm1270_vm11 = vcmp.eq.f32.partialorder %v1269_v20, 8.507059e+37  ;;  %v1272_v62 = vor.u32 1.1754944e-38, %v1271_v27 }
 0x1bd   : > { %v1278_v4 = vmul.f32 %v3111_v52, %v3697_v24  ;;  %v1425_v3 = vsel %vm1422_vm10, %v3381_v57, %v1420_v21  ;;  %v1124_v56 = vadd.f32 %v1123_v15, %v1059_v18  ;;  %v866_v44 = vpop.f32.mrf.mxu1  ;;  %1654 = vst [vmem:[%s3369_s17 + $0x20] sm:$0xff] %v3471_v43  ;;  %v3480_v26 = vadd.f32 %v1623_v45, %v1615_v40  ;;  %v3704_v18 = vld [vmem:[#allocation9_spill] sm:$0xff] }
 0x1be   : > { %vm1281_vm12 = vweird.f32 %v3111_v52  ;;  %v1431_v11 = vadd.f32 %v3385_v1, %v1430_v61  ;;  %v1273_v57 = vsel %vm1270_vm11, %v1272_v62, %v1268_v16  ;;  %v1286_v19 = vand.u32 2147483648, %v3033_v34 }
 0x1bf   : > { %v1279_v55 = vadd.f32 %v3111_v52, %v1278_v4  ;;  %v1436_v23 = vand.u32 2147483647, %v3328_v14  ;;  %2066 = vtanh.f32 %v1124_v56  ;;  %1655 = vst [vmem:[%s3369_s17 + $0x28] sm:$0xff] %v3480_v26  ;;  %vm1280_vm14 = vweird.f32 %v3033_v34 }
 0x1c0   : > { %v2065_v25 = vpop.eup %2064  ;;  %v1284_v46 = vand.u32 2147483647, %v3033_v34  ;;  %v1435_v37 = vsel %vm3490_vm13, %v3385_v1, %v1431_v11  ;;  %v867_v51 = vadd.f32 %v866_v44, %v2951_v38  ;;  %v1439_v48 = vor.u32 1.1754944e-38, %v1438_v39  ;;  %vm3506_vm15 = vmor %vm1280_vm14, %vm1281_vm12  ;;  %v1061_v1 = vpop.f32.mrf.mxu2  ;;  %v3705_v44 = vld [vmem:[#allocation7_spill] sm:$0xff] }
 0x1c1   : > { %v1616_v30 = vmul.f32 %v1608_v50, %v1425_v3  ;;  %v1624_v28 = vmul.f32 %v2065_v25, %v1273_v57  ;;  %v1283_v34 = vsel %vm3506_vm15, %v3111_v52, %v1279_v55  ;;  %vm1437_vm0 = vcmp.eq.f32.partialorder %v1436_v23, 8.507059e+37  ;;  %v1126_v39 = vpop.f32.mrf.mxu0  ;;  %v1002_v20 = vpop.f32.mrf.mxu3 }
 0x1c2   : > { %v932_v2 = vadd.f32 %v2807_v60, %v867_v51  ;;  %v1287_v38 = vor.u32 1.1754944e-38, %v1286_v19  ;;  %v1440_v33 = vsel %vm1437_vm0, %v1439_v48, %v1435_v37  ;;  %v1062_v7 = vadd.f32 %v1061_v1, %v997_v54  ;;  %v3706_v37 = vld [vmem:[#allocation12_spill] sm:$0xff]  ;;  %v3707_v51 = vld [vmem:[#allocation10_spill] sm:$0xff] }
 0x1c3   : > { %v3514_v0 = vadd.f32 %v1624_v28, %v1616_v30  ;;  %v805_v53 = vadd.f32 %v2845_v13, %v2891_v10  ;;  %vm1285_vm1 = vcmp.eq.f32.partialorder %v1284_v46, 8.507059e+37  ;;  %v1617_v36 = vmul.f32 %v1609_v29, %v1440_v33 }
 0x1c4   : > { %v1913_v49 = vmul.f32 -1.442695, %v932_v2  ;;  %v1288_v52 = vsel %vm1285_vm1, %v1287_v38, %v1283_v34  ;;  %v1127_v8 = vadd.f32 %v1126_v39, %v1062_v7  ;;  %v1000_v13 = vadd.f32 %v999_v22, %v2891_v10 }
 0x1c5   : > { %v2067_v35 = vpop.eup %2066  ;;  %1656 = vst [vmem:[%s3369_s17 + $0x30] sm:$0xff] %v3514_v0  ;;  %v869_v60 = vpop.f32.mrf.mxu1  ;;  %v808_v24 = vadd.f32 %v3704_v18, %v3703_v42  ;;  %v1003_v55 = vadd.f32 %v1002_v20, %v3703_v42  ;;  %v811_v48 = vadd.f32 %v3707_v51, %v3706_v37 }
 0x1c6   : > { %v1625_v6 = vmul.f32 %v2067_v35, %v1288_v52  ;;  %2068 = vpow2.f32 %v1913_v49  ;;  %v870_v59 = vadd.f32 %v869_v60, %v805_v53  ;;  %v1914_v9 = vmul.f32 -1.442695, %v1127_v8 }
 0x1c8   : > { %v3521_v17 = vadd.f32 %v1625_v6, %v1617_v36  ;;  %v935_v54 = vadd.f32 %v3702_v32, %v870_v59  ;;  %2070 = vpow2.f32 %v1914_v9  ;;  %v1064_v15 = vpop.f32.mrf.mxu2 }
 0x1c9   : > { %v1065_v61 = vadd.f32 %v1064_v15, %v1000_v13  ;;  %v1129_v12 = vpop.f32.mrf.mxu0  ;;  %v1005_v11 = vpop.f32.mrf.mxu3  ;;  %v3710_v15 = vld [vmem:[#allocation8_spill] sm:$0xff] }
 0x1ca   : > { %1657 = vst [vmem:[%s3369_s17 + $0x38] sm:$0xff] %v3521_v17  ;;  %v1915_v27 = vmul.f32 -1.442695, %v935_v54  ;;  %v1006_v14 = vadd.f32 %v1005_v11, %v3706_v37 }
 0x1cb   : > { %v1130_v40 = vadd.f32 %v1129_v12, %v1065_v61 }
 0x1cc   : > { %v2069_v21 = vpop.eup %2068  ;;  %2072 = vpow2.f32 %v1915_v27 }
 0x1cd   : > { %v1474_v47 = vadd.f32 1.0, %v2069_v21  ;;  %v872_v45 = vpop.f32.mrf.mxu1  ;;  %v1916_v10 = vmul.f32 -1.442695, %v1130_v40 }
 0x1ce   : > { %v2071_v4 = vpop.eup %2070  ;;  %v873_v62 = vadd.f32 %v872_v45, %v808_v24 }
 0x1cf   : > { %2074 = vrcp.f32 %v1474_v47  ;;  %v3529_v16 = vadd.f32 1.0, %v2071_v4  ;;  %v1491_v57 = vand.u32 2147483647, %v1474_v47  ;;  %vm1487_vm2 = vweird.f32 %v1474_v47 }
 0x1d0   : > { %v938_v50 = vadd.f32 %v3705_v44, %v873_v62  ;;  %v1067_v19 = vpop.f32.mrf.mxu2 }
 0x1d1   : > { %2076 = vrcp.f32 %v3529_v16  ;;  %v1132_v23 = vpop.f32.mrf.mxu0  ;;  %v1068_v46 = vadd.f32 %v1067_v19, %v1003_v55  ;;  %vm3543_vm3 = vcmp.eq.f32.partialorder %v1491_v57, 8.507059e+37  ;;  %v1508_v38 = vand.u32 2147483648, %v3529_v16 }
 0x1d2   : > { %v2073_v3 = vpop.eup %2072  ;;  %2078 = vpow2.f32 %v1916_v10  ;;  %v1917_v22 = vmul.f32 -1.442695, %v938_v50  ;;  %vm1502_vm5 = vweird.f32 %v3529_v16  ;;  %v1506_v36 = vand.u32 2147483647, %v3529_v16 }
 0x1d3   : > { %v3532_v56 = vadd.f32 1.0, %v2073_v3  ;;  %2080 = vtanh.f32 %v3354_v41  ;;  %v1493_v41 = vand.u32 2147483648, %v1474_v47  ;;  %v1133_v34 = vadd.f32 %v1132_v23, %v1068_v46 }
 0x1d4   : > { %v1509_v32 = vor.u32 1.1754944e-38, %v1508_v38  ;;  %vm1507_vm10 = vcmp.eq.f32.partialorder %v1506_v36, 8.507059e+37 }
 0x1d5   : > { %v2075_v63 = vpop.eup %2074  ;;  %2082 = vrcp.f32 %v3532_v56  ;;  %v1918_v7 = vmul.f32 -1.442695, %v1133_v34  ;;  %v875_v39 = vpop.f32.mrf.mxu1  ;;  %v1494_v49 = vor.u32 1.1754944e-38, %v1493_v41  ;;  %v1521_v54 = vand.u32 2147483647, %v3532_v56 }
 0x1d6   : > { %2084 = vtanh.f32 %v3361_v31  ;;  %v1483_v25 = vmul.f32 %v2075_v63, %v1474_v47  ;;  %vm1488_vm4 = vweird.f32 %v2075_v63  ;;  %v876_v52 = vadd.f32 %v875_v39, %v811_v48 }
 0x1d7   : > { %2086 = vtanh.f32 %v3422_v58  ;;  %v2077_v30 = vpop.eup %2076  ;;  %vm1489_vm6 = vmor %vm1487_vm2, %vm1488_vm4  ;;  %v1523_v47 = vand.u32 2147483648, %v3532_v56  ;;  %vm1517_vm11 = vweird.f32 %v3532_v56  ;;  %vm1522_vm13 = vcmp.eq.f32.partialorder %v1521_v54, 8.507059e+37 }
 0x1d8   : > { %v1484_v28 = vsub.f32 1.0, %v1483_v25  ;;  %2088 = vpow2.f32 %v1917_v22  ;;  %v2079_v2 = vpop.eup %2078  ;;  %v1498_v31 = vmul.f32 %v2077_v30, %v3529_v16  ;;  %vm1503_vm7 = vweird.f32 %v2077_v30  ;;  %v1070_v4 = vpop.f32.mrf.mxu2 }
 0x1d9   : > { %v2081_v33 = vpop.eup %2080  ;;  %v3549_v58 = vadd.f32 1.0, %v2079_v2  ;;  %v941_v61 = vadd.f32 %v3710_v15, %v876_v52  ;;  %vm1504_vm9 = vmor %vm1502_vm5, %vm1503_vm7  ;;  %v1071_v10 = vadd.f32 %v1070_v4, %v1006_v14  ;;  %v1135_v62 = vpop.f32.mrf.mxu0  ;;  %v1524_v55 = vor.u32 1.1754944e-38, %v1523_v47 }
 0x1da   : > { %v1485_v29 = vmul.f32 %v2075_v63, %v1484_v28  ;;  %v1499_v35 = vsub.f32 1.0, %v1498_v31 }
 0x1db   : > { %v2083_v53 = vpop.eup %2082  ;;  %2090 = vrcp.f32 %v3549_v58  ;;  %v1919_v24 = vmul.f32 -1.442695, %v941_v61  ;;  %v1136_v19 = vadd.f32 %v1135_v62, %v1071_v10  ;;  %v1538_v46 = vand.u32 2147483648, %v3549_v58 }
 0x1dc   : > { %v2085_v8 = vpop.eup %2084  ;;  %v1486_v60 = vadd.f32 %v2075_v63, %v1485_v29  ;;  %v1513_v6 = vmul.f32 %v2083_v53, %v3532_v56  ;;  %v1500_v9 = vmul.f32 %v2077_v30, %v1499_v35  ;;  %2092 = vpow2.f32 %v1918_v7 }
 0x1dd   : > { %v2087_v59 = vpop.eup %2086  ;;  %vm1518_vm8 = vweird.f32 %v2083_v53  ;;  %v1920_v37 = vmul.f32 -1.442695, %v1136_v19  ;;  %v1536_v48 = vand.u32 2147483647, %v3549_v58  ;;  %vm1532_vm15 = vweird.f32 %v3549_v58 }
 0x1de   : > { %v2089_v13 = vpop.eup %2088  ;;  %v1490_v20 = vsel %vm1489_vm6, %v2075_v63, %v1486_v60  ;;  %v1514_v27 = vsub.f32 1.0, %v1513_v6  ;;  %v1501_v21 = vadd.f32 %v2077_v30, %v1500_v9  ;;  %vm1519_vm12 = vmor %vm1517_vm11, %vm1518_vm8 }
 0x1df   : > { %v1495_v12 = vsel %vm3543_vm3, %v1494_v49, %v1490_v20  ;;  %v3564_v18 = vadd.f32 1.0, %v2089_v13  ;;  %vm1537_vm1 = vcmp.eq.f32.partialorder %v1536_v48, 8.507059e+37 }
 0x1e0   : > { %v1642_v40 = vmul.f32 %v2081_v33, %v1495_v12  ;;  %v1515_v42 = vmul.f32 %v2083_v53, %v1514_v27  ;;  %v1505_v45 = vsel %vm1504_vm9, %v2077_v30, %v1501_v21 }
 0x1e1   : > { %v2091_v3 = vpop.eup %2090  ;;  %v1510_v44 = vsel %vm1507_vm10, %v1509_v32, %v1505_v45  ;;  %2094 = vrcp.f32 %v3564_v18  ;;  %v1551_v33 = vand.u32 2147483647, %v3564_v18  ;;  %v1553_v29 = vand.u32 2147483648, %v3564_v18 }
 0x1e2   : > { %1658 = vst [vmem:[%s3567_s8] sm:$0xff] %v1642_v40  ;;  %v1516_v50 = vadd.f32 %v2083_v53, %v1515_v42  ;;  %v1643_v16 = vmul.f32 %v2085_v8, %v1510_v44  ;;  %v1528_v11 = vmul.f32 %v2091_v3, %v3549_v58  ;;  %v2093_v63 = vpop.eup %2092  ;;  %2096 = vpow2.f32 %v1919_v24 }
 0x1e3   : > { %v1479_v22 = vadd.f32 1.0, %v2093_v63  ;;  %2098 = vtanh.f32 %v3432_v5  ;;  %vm1533_vm14 = vweird.f32 %v2091_v3  ;;  %v1539_v5 = vor.u32 1.1754944e-38, %v1538_v46 }
 0x1e4   : > { %v1520_v57 = vsel %vm1519_vm12, %v2083_v53, %v1516_v50  ;;  %1659 = vst [vmem:[%s3567_s8 + $0x8] sm:$0xff] %v1643_v16  ;;  %v1529_v25 = vsub.f32 1.0, %v1528_v11  ;;  %vm1534_vm0 = vmor %vm1532_vm15, %vm1533_vm14  ;;  %vm1547_vm3 = vweird.f32 %v3564_v18  ;;  %vm1552_vm5 = vcmp.eq.f32.partialorder %v1551_v33, 8.507059e+37 }
 0x1e5   : > { %v1525_v23 = vsel %vm1522_vm13, %v1524_v55, %v1520_v57  ;;  %2100 = vrcp.f32 %v1479_v22  ;;  %v1568_v36 = vand.u32 2147483648, %v1479_v22  ;;  %v1566_v32 = vand.u32 2147483647, %v1479_v22 }
 0x1e6   : > { %v1644_v56 = vmul.f32 %v2087_v59, %v1525_v23  ;;  %v1530_v51 = vmul.f32 %v2091_v3, %v1529_v25  ;;  %2102 = vpow2.f32 %v1920_v37  ;;  %vm1562_vm7 = vweird.f32 %v1479_v22 }
 0x1e7   : > { %v2095_v41 = vpop.eup %2094  ;;  %2104 = vtanh.f32 %v3471_v43  ;;  %v1554_v43 = vor.u32 1.1754944e-38, %v1553_v29  ;;  %vm1567_vm9 = vcmp.eq.f32.partialorder %v1566_v32, 8.507059e+37 }
 0x1e8   : > { %1660 = vst [vmem:[%s3567_s8 + $0x10] sm:$0xff] %v1644_v56  ;;  %v1531_v30 = vadd.f32 %v2091_v3, %v1530_v51  ;;  %v1543_v28 = vmul.f32 %v2095_v41, %v3564_v18  ;;  %v2097_v14 = vpop.eup %2096  ;;  %vm1548_vm2 = vweird.f32 %v2095_v41 }
 0x1e9   : > { %v1480_v1 = vadd.f32 1.0, %v2097_v14  ;;  %v2099_v31 = vpop.eup %2098  ;;  %vm1549_vm4 = vmor %vm1547_vm3, %vm1548_vm2 }
 0x1ea   : > { %v1535_v34 = vsel %vm1534_vm0, %v2091_v3, %v1531_v30  ;;  %v1544_v2 = vsub.f32 1.0, %v1543_v28 }
 0x1eb   : > { %v1540_v38 = vsel %vm1537_vm1, %v1539_v5, %v1535_v34  ;;  %v2101_v7 = vpop.eup %2100  ;;  %2106 = vrcp.f32 %v1480_v1  ;;  %v1581_v40 = vand.u32 2147483647, %v1480_v1  ;;  %v1583_v42 = vand.u32 2147483648, %v1480_v1  ;;  %v1694_v56 = vld [vmem:[%s3567_s8 + $0x8] sm:$0xff] (%p2206_p5) }
 0x1ec   : > { %v1645_v58 = vmul.f32 %v2099_v31, %v1540_v38  ;;  %v1545_v39 = vmul.f32 %v2095_v41, %v1544_v2  ;;  %v2103_v53 = vpop.eup %2102  ;;  %v1558_v49 = vmul.f32 %v2101_v7, %v1479_v22  ;;  %2108 = vtanh.f32 %v3480_v26  ;;  %v1692_v22 = vld [vmem:[%s3567_s8] sm:$0xff] (%p2206_p5)  ;;  %1695 = vst [vmem:[%s1679_s12 + $0x8] sm:$0xff] (%p2206_p5), %v1694_v56 }
 0x1ed   : > { %v1481_v52 = vadd.f32 1.0, %v2103_v53  ;;  %v2105_v6 = vpop.eup %2104  ;;  %vm1563_vm6 = vweird.f32 %v2101_v7  ;;  %v1569_v26 = vor.u32 1.1754944e-38, %v1568_v36  ;;  %vm1577_vm11 = vweird.f32 %v1480_v1  ;;  %1693 = vst [vmem:[%s1679_s12] sm:$0xff] (%p2206_p5), %v1692_v22 }
 0x1ee   : > { %1661 = vst [vmem:[%s3567_s8 + $0x18] sm:$0xff] %v1645_v58  ;;  %v1546_v35 = vadd.f32 %v2095_v41, %v1545_v39  ;;  %v1559_v8 = vsub.f32 1.0, %v1558_v49  ;;  %vm1564_vm8 = vmor %vm1562_vm7, %vm1563_vm6  ;;  %vm1582_vm13 = vcmp.eq.f32.partialorder %v1581_v40, 8.507059e+37  ;;  %v1584_v62 = vor.u32 1.1754944e-38, %v1583_v42 }
 0x1ef   : > { %2110 = vrcp.f32 %v1481_v52  ;;  %v1598_v3 = vand.u32 2147483648, %v1481_v52  ;;  %v1596_v50 = vand.u32 2147483647, %v1481_v52  ;;  %vm1592_vm15 = vweird.f32 %v1481_v52  ;;  %v1696_v46 = vld [vmem:[%s3567_s8 + $0x10] sm:$0xff] (%p2206_p5) }
 0x1f0   : > { %v1550_v60 = vsel %vm1549_vm4, %v2095_v41, %v1546_v35  ;;  %v1560_v9 = vmul.f32 %v2101_v7, %v1559_v8  ;;  %2112 = vtanh.f32 %v3514_v0  ;;  %1697 = vst [vmem:[%s1679_s12 + $0x20] sm:$0xff] (%p2206_p5), %v1696_v46 }
 0x1f1   : > { %v1555_v59 = vsel %vm1552_vm5, %v1554_v43, %v1550_v60  ;;  %v2107_v54 = vpop.eup %2106  ;;  %2114 = vtanh.f32 %v3521_v17  ;;  %v1599_v57 = vor.u32 1.1754944e-38, %v1598_v3  ;;  %vm1597_vm1 = vcmp.eq.f32.partialorder %v1596_v50, 8.507059e+37 }
 0x1f2   : > { %v1646_v13 = vmul.f32 %v2105_v6, %v1555_v59  ;;  %v1561_v20 = vadd.f32 %v2101_v7, %v1560_v9  ;;  %v1573_v27 = vmul.f32 %v2107_v54, %v1480_v1  ;;  %v2109_v15 = vpop.eup %2108  ;;  %vm1578_vm10 = vweird.f32 %v2107_v54 }
 0x1f3   : > { %vm1579_vm12 = vmor %vm1577_vm11, %vm1578_vm10 }
 0x1f4   : > { %1662 = vst [vmem:[%s3567_s8 + $0x20] sm:$0xff] %v1646_v13  ;;  %v1565_v61 = vsel %vm1564_vm8, %v2101_v7, %v1561_v20  ;;  %v1574_v12 = vsub.f32 1.0, %v1573_v27 }
 0x1f5   : > { %v2111_v21 = vpop.eup %2110  ;;  %v1570_v47 = vsel %vm1567_vm9, %v1569_v26, %v1565_v61  ;;  %v1698_v37 = vld [vmem:[%s3567_s8 + $0x18] sm:$0xff] (%p2206_p5) }
 0x1f6   : > { %v1647_v18 = vmul.f32 %v2109_v15, %v1570_v47  ;;  %v1575_v24 = vmul.f32 %v2107_v54, %v1574_v12  ;;  %v1588_v4 = vmul.f32 %v2111_v21, %v1481_v52  ;;  %vm1593_vm14 = vweird.f32 %v2111_v21  ;;  %v2113_v16 = vpop.eup %2112  ;;  %1699 = vst [vmem:[%s1679_s12 + $0x28] sm:$0xff] (%p2206_p5), %v1698_v37 }
 0x1f7   : > { %vm1594_vm0 = vmor %vm1592_vm15, %vm1593_vm14  ;;  %v2115_v17 = vpop.eup %2114 }
 0x1f8   : > { %1663 = vst [vmem:[%s3567_s8 + $0x28] sm:$0xff] %v1647_v18  ;;  %v1576_v45 = vadd.f32 %v2107_v54, %v1575_v24  ;;  %v1589_v10 = vsub.f32 1.0, %v1588_v4 }
 0x1fa   : > { %v1580_v44 = vsel %vm1579_vm12, %v2107_v54, %v1576_v45  ;;  %v1590_v0 = vmul.f32 %v2111_v21, %v1589_v10 }
 0x1fb   : > { %v1585_v55 = vsel %vm1582_vm13, %v1584_v62, %v1580_v44  ;;  %v1700_v51 = vld [vmem:[%s3567_s8 + $0x20] sm:$0xff] (%p2206_p5) }
 0x1fc   : > { %v1648_v11 = vmul.f32 %v2113_v16, %v1585_v55  ;;  %v1591_v63 = vadd.f32 %v2111_v21, %v1590_v0  ;;  %1701 = vst [vmem:[%s1679_s12 + $0x40] sm:$0xff] (%p2206_p5), %v1700_v51 }
 0x1fe   : > { %1664 = vst [vmem:[%s3567_s8 + $0x30] sm:$0xff] %v1648_v11  ;;  %v1595_v19 = vsel %vm1594_vm0, %v2111_v21, %v1591_v63  ;;  %1676 = sbr.rel (!%p2206_p5) target bundleno = 523 (0x20b), region = 86 }
 0x1ff   : > { %v1600_v23 = vsel %vm1597_vm1, %v1599_v57, %v1595_v19  ;;  %v1702_v48 = vld [vmem:[%s3567_s8 + $0x28] sm:$0xff] (%p2206_p5) }
 0x200   : > { %v1649_v25 = vmul.f32 %v2115_v17, %v1600_v23  ;;  %1703 = vst [vmem:[%s1679_s12 + $0x48] sm:$0xff] (%p2206_p5), %v1702_v48 }
 0x202   : > { %1665 = vst [vmem:[%s3567_s8 + $0x38] sm:$0xff] %v1649_v25 }
 0x205   : > { %v1704_v41 = vld [vmem:[%s3567_s8 + $0x30] sm:$0xff] }
 0x206   : > { %1705 = vst [vmem:[%s1679_s12 + $0x60] sm:$0xff] %v1704_v41 }
 0x209   : > { %v1706_v30 = vld [vmem:[%s3567_s8 + $0x38] sm:$0xff] }
 0x20a   : > { %1707 = vst [vmem:[%s1679_s12 + $0x68] sm:$0xff] %v1706_v30 }
 0x20b PF: > { %1713 = sbr.rel (!%p2206_p5) target bundleno = 533 (0x215), region = 109  ;;  %s1932_s13 = sshll.u32 (%p2206_p5), %s2187_s21, 4  ;;  %v1729_v28 = vld [vmem:[%s3369_s17] sm:$0xff] (%p2206_p5)  ;;  %v1731_v14 = vld [vmem:[%s3369_s17 + $0x8] sm:$0xff] (%p2206_p5)  ;;  %v1733_v5 = vld [vmem:[%s3369_s17 + $0x10] sm:$0xff] (%p2206_p5) }
 0x20c   : > { %s1716_s16 = scalar_lea.vmem (%p2206_p5), %s3636_s5, %s1932_s13  ;;  %v1735_v34 = vld [vmem:[%s3369_s17 + $0x18] sm:$0xff] (%p2206_p5)  ;;  %v1737_v2 = vld [vmem:[%s3369_s17 + $0x20] sm:$0xff] (%p2206_p5)  ;;  %v1739_v1 = vld [vmem:[%s3369_s17 + $0x28] sm:$0xff] (%p2206_p5) }
 0x20d   : > { %1730 = vst [vmem:[%s1716_s16] sm:$0xff] (%p2206_p5), %v1729_v28  ;;  %v1741_v31 = vld [vmem:[%s3369_s17 + $0x30] sm:$0xff] (%p2206_p5)  ;;  %v1743_v38 = vld [vmem:[%s3369_s17 + $0x38] sm:$0xff] (%p2206_p5) }
 0x20e   : > { %1732 = vst [vmem:[%s1716_s16 + $0x8] sm:$0xff] (%p2206_p5), %v1731_v14 }
 0x20f   : > { %1734 = vst [vmem:[%s1716_s16 + $0x20] sm:$0xff] (%p2206_p5), %v1733_v5 }
 0x210   : > { %1736 = vst [vmem:[%s1716_s16 + $0x28] sm:$0xff] %v1735_v34 }
 0x211   : > { %1738 = vst [vmem:[%s1716_s16 + $0x40] sm:$0xff] %v1737_v2 }
 0x212   : > { %1740 = vst [vmem:[%s1716_s16 + $0x48] sm:$0xff] %v1739_v1 }
 0x213   : > { %1742 = vst [vmem:[%s1716_s16 + $0x60] sm:$0xff] %v1741_v31 }
 0x214   : > { %1744 = vst [vmem:[%s1716_s16 + $0x68] sm:$0xff] %v1743_v38 }
 0x215 PF: > { %p13_p10 = scmp.ge.s32.totalorder %s2190_s22, 4   ;;  %s3711_s18 = smov %s2134_s19 }
 0x216   : > { %s3712_s19 = smov %s2200_s25  ;;  %s3713_s20 = smov %s2190_s22 }
 0x217   :  { %15 = sbr.rel (!%p13_p10) target bundleno = 2 (0x2), region = 183 }

</bundles_post_ra>
